<compile_context>
chip_gen: v5e
topology: v5e:2x2
jax: 0.10.0
libtpu: 0.0.40
codegen_flags: <defaults>
</compile_context>

<pallas_src>
import functools

import numpy as np
import jax
import jax.numpy as jnp
from jax.experimental import pallas as pl
from jax.experimental.pallas import tpu as pltpu


def _gaussian_1d(sigma: float, kernel_size: int) -> np.ndarray:
    """Normalized 1D Gaussian with the module's sigma clamping.

    (g1/sum)⊗(g1/sum)⊗(g1/sum) == k3/k3.sum() exactly, so the separable
    factorization reproduces set_weights()."""
    sig = max(0.1, min(float(sigma), 10.0))
    k = np.arange(kernel_size, dtype=np.float64) - (kernel_size // 2)
    g = np.exp(-(k ** 2) / (2.0 * sig ** 2))
    return (g / g.sum()).astype(np.float32)


def gaussian_kernel_3d(sigma: float, kernel_size: int) -> jnp.ndarray:
    """Full 3D weight exactly as set_weights() builds it (used for the reference)."""
    sig = max(0.1, min(float(sigma), 10.0))
    k1 = jnp.arange(kernel_size, dtype=jnp.float32) - (kernel_size // 2)
    k1 = jnp.exp(-(k1 ** 2) / (2.0 * sig ** 2))
    k3 = jnp.einsum("i,j,k->ijk", k1, k1, k1)
    return k3 / jnp.sum(k3)


def _folded_blur_matrix(n: int, g1: np.ndarray) -> np.ndarray:
    """(n, n) matrix A so that out[o] = sum_i x[i] * A[i, o] equals the 1D
    'replicate'-padded cross-correlation with taps g1 (boundary weights folded
    onto the edge rows). Valid for any K vs n (clipping handles K > n)."""
    K = g1.shape[0]
    pad = K // 2
    A = np.zeros((n, n), dtype=np.float32)
    out_idx = np.arange(n)
    for k in range(K):
        src = np.clip(out_idx + k - pad, 0, n - 1)
        np.add.at(A, (src, out_idx), g1[k])
    return A


@functools.lru_cache(maxsize=32)
def _blur_matrices(sigma: float, kernel_size: int, D: int, H: int, W: int,
                   hw_padded: int):
    """Host-side weight construction, cached per (sigma, shape). Under jit these
    become compile-time constants, so there is no per-call HBM upload."""
    g1 = _gaussian_1d(sigma, kernel_size)
    bD = np.ascontiguousarray(_folded_blur_matrix(D, g1).T)            # (D, D)
    mHW = np.kron(_folded_blur_matrix(H, g1), _folded_blur_matrix(W, g1))  # (HW, HW)
    hw = H * W
    if hw_padded != hw:
        # Zero rows/cols for the padded lanes: padded input lanes are zero and
        # padded output lanes come out zero (sliced off in the wrapper).
        mHW = np.pad(mHW, ((0, hw_padded - hw), (0, hw_padded - hw)))
    return bD, mHW


def _blur_kernel(bD_ref, mHW_ref, x_ref, o_ref, *, precision):
    # bD_ref : (td, D)     f32 VMEM -- rows of A_D^T for this output D-tile
    # mHW_ref: (HWp, HWp)  f32 VMEM -- kron(A_H, A_W): joint H/W blur on lanes
    # x_ref  : (1, D, HWp) f32 VMEM -- one full volume, H*W flattened onto lanes
    # o_ref  : (1, td, HWp)
    yd = jnp.dot(
        bD_ref[...], x_ref[0],
        preferred_element_type=jnp.float32, precision=precision,
    )  # (td, HWp) -- D-axis blur on the MXU, lane-dense
    out = jnp.dot(
        yd, mHW_ref[...],
        preferred_element_type=jnp.float32, precision=precision,
    )  # (td, HWp) -- H and W blur in one MXU matmul
    o_ref[0] = out.astype(o_ref.dtype)


def _pick_d_tile(D: int, n_batch: int) -> int:
    """td = D up to 256 (one big MXU-filling tile); for D > 256 the largest
    multiple of 8 (<= 256) dividing D. If the parallel grid would only have a
    single step (batch == 1, one D tile), split D once so v7x's second
    TensorCore gets work; on 1-TC chips this costs one extra (cheap) step."""
    if D <= 256:
        td = D
    else:
        td = D
        for cand in range(256, 7, -8):
            if D % cand == 0:
                td = cand
                break
    if n_batch * (D // td) < 2:
        half = (td // 2) - (td // 2) % 8
        for cand in range(half, 7, -8):
            if D % cand == 0:
                return cand
    return td


@functools.partial(jax.jit, static_argnames=("sigma", "precision"))
def gaussian_blur_3d(vol: jnp.ndarray, sigma: float,
                     precision=jax.lax.Precision.HIGHEST) -> jnp.ndarray:
    """vol: (N, 1, D, H, W) float32 (NCDHW). Returns the same shape/dtype.

    precision=HIGHEST  -> f32-emulated MXU passes, matches the PyTorch module to ~1e-6.
    precision=DEFAULT  -> single-pass bf16 MXU (f32 accumulation), ~3-6x fewer MXU
                          passes, error ~1e-3 (validated in __main__)."""
    N, C, D, H, W = vol.shape
    assert C == 1, "GaussianBlur3D conv is 1 -> 1 channel"
    K = 1 + 6 * int(sigma)
    NC = N * C
    HW = H * W
    HWp = -(-HW // 128) * 128                 # lane-dense (multiple of 128) lane axis
    td = _pick_d_tile(D, NC)
    n_d = D // td

    bD_np, mHW_np = _blur_matrices(float(sigma), K, D, H, W, HWp)
    bD = jnp.asarray(bD_np)                    # (D, D)  left-multiply form
    mHW = jnp.asarray(mHW_np)                  # (HWp, HWp)

    x = vol.reshape(NC, D, HW)                 # free reshape, H*W on lanes
    if HWp != HW:
        x = jnp.pad(x, ((0, 0), (0, 0), (0, HWp - HW)))

    # VMEM budget for the chosen blocks (double-buffered inputs/outputs + the
    # (td, HWp) f32 intermediate); keep it <= 64 MiB so it is valid on v7x too.
    vmem_bytes = 4 * (2 * td * D + 2 * HWp * HWp + 2 * D * HWp
                      + 2 * td * HWp + 2 * td * HWp)
    vmem_limit = int(min(max(vmem_bytes + (16 << 20), 32 << 20), 64 << 20))

    flops = 2 * NC * (D * D * HWp + D * HWp * HWp)
    bytes_accessed = 4 * (2 * NC * D * HWp + D * D + HWp * HWp)

    # Mosaic's dot lowering distinguishes default vs HIGHEST; pass None for the
    # default single-pass bf16 path.
    prec = None if precision == jax.lax.Precision.DEFAULT else precision

    out = pl.pallas_call(
        functools.partial(_blur_kernel, precision=prec),
        out_shape=jax.ShapeDtypeStruct((NC, D, HWp), vol.dtype),
        grid=(NC, n_d),
        in_specs=[
            pl.BlockSpec((td, D), lambda b, j: (j, 0)),         # A_D^T rows for this D-tile
            pl.BlockSpec((HWp, HWp), lambda b, j: (0, 0)),      # kron(A_H, A_W), fetched once
            pl.BlockSpec((1, D, HWp), lambda b, j: (b, 0, 0)),  # full volume, reused across j
        ],
        out_specs=pl.BlockSpec((1, td, HWp), lambda b, j: (b, j, 0)),
        compiler_params=pltpu.CompilerParams(
            dimension_semantics=("parallel", "parallel"),
            vmem_limit_bytes=vmem_limit,
        ),
        cost_estimate=pl.CostEstimate(
            flops=flops, transcendentals=0, bytes_accessed=bytes_accessed),
    )(bD, mHW, x)

    if HWp != HW:
        out = out[:, :, :HW]
    return out.reshape(N, C, D, H, W)


if __name__ == "__main__":
    key = jax.random.PRNGKey(0)
    N, C, D, H, W = 2, 1, 16, 16, 16
    sigma = 1.0  # -> kernel_size = 7, padding = 3

    vol = jax.random.normal(key, (N, C, D, H, W), dtype=jnp.float32)

    # Module-faithful path (f32-emulated MXU passes).
    out = jax.block_until_ready(gaussian_blur_3d(vol, sigma=sigma))
    # Fast path from the perf review: single-pass bf16 MXU, f32 accumulation.
    out_fast = jax.block_until_ready(
        gaussian_blur_3d(vol, sigma=sigma, precision=jax.lax.Precision.DEFAULT))

    # Pure-JAX reference (replicate pad + VALID conv with the module's 3D weight).
    K = 1 + 6 * int(sigma)
    pad = K // 2
    w3 = gaussian_kernel_3d(sigma, K).reshape(1, 1, K, K, K)
    xp_full = jnp.pad(vol, ((0, 0), (0, 0), (pad, pad), (pad, pad), (pad, pad)),
                      mode="edge")
    ref = jax.lax.conv_general_dilated(
        xp_full, w3, window_strides=(1, 1, 1), padding="VALID",
        dimension_numbers=("NCDHW", "OIDHW", "NCDHW"),
        precision=jax.lax.Precision.HIGHEST,
    )

    assert out.shape == (N, C, D, H, W)
    assert out.dtype == vol.dtype
    assert jnp.allclose(out, ref, rtol=1e-5, atol=1e-5)
    # bf16-operand path: inputs/weights rounded to bf16 -> ~1e-3-level deviation.
    assert jnp.allclose(out_fast, ref, rtol=2e-2, atol=2e-2)

    print("KERNEL_OK")
</pallas_src>

<mosaic_0001>
module attributes {stable_mosaic.version = 11 : i64} {
  func.func @_blur_kernel(%arg0: i32, %arg1: i32, %arg2: memref<16x16xf32, #tpu.memory_space<vmem>>, %arg3: memref<256x256xf32, #tpu.memory_space<vmem>>, %arg4: memref<1x16x256xf32, #tpu.memory_space<vmem>>, %arg5: memref<1x16x256xf32, #tpu.memory_space<vmem>>) attributes {dimension_semantics = [#tpu.dimension_semantics<parallel>, #tpu.dimension_semantics<parallel>], iteration_bounds = array<i64: 2, 1>, scalar_prefetch = 0 : i64, scratch_operands = 0 : i64, tpu.core_type = #tpu.core_type<tc>, window_params = [{transform_indices = @transform_0, window_bounds = array<i64: 16, 16>}, {pipeline_mode = #tpu.pipeline_mode<synchronous>, transform_indices = @transform_1, window_bounds = array<i64: 256, 256>}, {transform_indices = @transform_2, window_bounds = array<i64: 1, 16, 256>}, {transform_indices = @transform_3, window_bounds = array<i64: 1, 16, 256>}]} {
    %c0 = arith.constant 0 : index
    %c0_0 = arith.constant 0 : index
    %0 = vector.load %arg2[%c0, %c0_0] : memref<16x16xf32, #tpu.memory_space<vmem>>, vector<16x16xf32>
    %c0_1 = arith.constant 0 : index
    %c0_2 = arith.constant 0 : index
    %c0_3 = arith.constant 0 : index
    %1 = vector.load %arg4[%c0_1, %c0_2, %c0_3] : memref<1x16x256xf32, #tpu.memory_space<vmem>>, vector<1x16x256xf32>
    %2 = vector.shape_cast %1 : vector<1x16x256xf32> to vector<16x256xf32>
    %cst = arith.constant dense<0.000000e+00> : vector<16x256xf32>
    %3 = tpu.matmul %0, %2, %cst {dimension_numbers = #tpu.dot_dimension_numbers<[1], [0], [0], [1], [0, 0, 1, 1], [], []>, precision = #tpu.contract_precision<fp32>} : vector<16x16xf32>, vector<16x256xf32>, vector<16x256xf32> -> vector<16x256xf32>
    %c0_4 = arith.constant 0 : index
    %c0_5 = arith.constant 0 : index
    %4 = vector.load %arg3[%c0_4, %c0_5] : memref<256x256xf32, #tpu.memory_space<vmem>>, vector<256x256xf32>
    %cst_6 = arith.constant dense<0.000000e+00> : vector<16x256xf32>
    %5 = tpu.matmul %3, %4, %cst_6 {dimension_numbers = #tpu.dot_dimension_numbers<[1], [0], [0], [1], [0, 0, 1, 1], [], []>, precision = #tpu.contract_precision<fp32>} : vector<16x256xf32>, vector<256x256xf32>, vector<16x256xf32> -> vector<16x256xf32>
    %c0_7 = arith.constant 0 : index
    %c0_8 = arith.constant 0 : index
    %c0_9 = arith.constant 0 : index
    %6 = vector.load %arg5[%c0_7, %c0_8, %c0_9] : memref<1x16x256xf32, #tpu.memory_space<vmem>>, vector<1x16x256xf32>
    %7 = vector.shape_cast %6 : vector<1x16x256xf32> to vector<16x256xf32>
    %8 = vector.shape_cast %5 : vector<16x256xf32> to vector<1x16x256xf32>
    tpu.vector_store %arg5[%c0_7, %c0_8, %c0_9], %8 {strides = array<i32>} : memref<1x16x256xf32, #tpu.memory_space<vmem>>, vector<1x16x256xf32>,
    return
  }
  func.func @transform_0(%arg0: i32, %arg1: i32) -> (i32, i32) {
    %c0_i32 = arith.constant 0 : i32
    %c0_i32_0 = arith.constant 0 : i32
    return %arg1, %c0_i32 : i32, i32
  }
  func.func @transform_1(%arg0: i32, %arg1: i32) -> (i32, i32) {
    %c0_i32 = arith.constant 0 : i32
    %c0_i32_0 = arith.constant 0 : i32
    %c0_i32_1 = arith.constant 0 : i32
    return %c0_i32, %c0_i32_0 : i32, i32
  }
  func.func @transform_2(%arg0: i32, %arg1: i32) -> (i32, i32, i32) {
    %c0_i32 = arith.constant 0 : i32
    %c0_i32_0 = arith.constant 0 : i32
    %c0_i32_1 = arith.constant 0 : i32
    return %arg0, %c0_i32, %c0_i32_0 : i32, i32, i32
  }
  func.func @transform_3(%arg0: i32, %arg1: i32) -> (i32, i32, i32) {
    %c0_i32 = arith.constant 0 : i32
    %c0_i32_0 = arith.constant 0 : i32
    return %arg0, %arg1, %c0_i32 : i32, i32, i32
  }
}

</mosaic_0001>

<bundles_post_ra>
// kernel: gaussian_blur_3d.1
= control target key start
LH: loop header
LB: loop body
LE: loop exit
PB: predicated region body
PF: predicated region fallthrough
CT: control target
= control target key end

     0   :  { %s2351_s12 = smov 0   ;;  %s2353_s13 = smov 0   ;;  %s3695_s0 = inlined_call_operand.vmem [shape: f32[16,16], index: 0, kind: input, shape index: {}]   ;;  %s3696_s1 = inlined_call_operand.vmem [shape: f32[256,256], index: 1, kind: input, shape index: {}]   ;;  %s3697_s2 = inlined_call_operand.vmem [shape: f32[2,16,256], index: 2, kind: input, shape index: {}]   ;;  %s3698_s3 = inlined_call_operand.vmem [shape: f32[2,16,256], index: 3, kind: output, shape index: {}]  }
   0x1   :  { %s2355_s14 = smov 0  }
   0x2 LB: > { %s25_s15 = sadd.s32 1, %s2325_s13  ;;  %p2274_p0 = scmp.ge.s32.totalorder %s2329_s14, 1  ;;  %s2329_s14 = sphi %s2355_s14, %s13_s14   ;;  %s2325_s13 = sphi %s2353_s13, %s3798_s13   ;;  %s2321_s12 = sphi %s2351_s12, %s3797_s12  }
   0x3   : > { %p27_p1 = scmp.ge.s32.totalorder %s25_s15, 2  ;;  %p162_p2 = scmp.lt.s32.totalorder %s2329_s14, 3 }
   0x5   : > { %s3800_s15 = smov (%p27_p1, %s25_s15), 0  ;;  %p163_p3 = pnand %p2274_p0, %p162_p2 }
   0x7   : > { %166 = sbr.rel (%p163_p3) target bundleno = 474 (0x1da), region = 32 }
   0xc   : > { %p202_p4 = scmp.lt.s32.totalorder %s2321_s12, 1  ;;  %v218_v0 = vld [vmem:[%s3695_s0] sm:$0xff]  ;;  %vm224_vm0 = vcmask 130048   ;;  %v219_v1 = vld [vmem:[%s3695_s0 + $0x8] sm:$0xff]  ;;  %v641_v38 = vld [vmem:[%s3696_s1 + $0xf0] sm:$0xff] }
   0xd   : > { %v226_v2 = vsel %vm224_vm0, %v218_v0, 0  ;;  %v229_v3 = vsel %vm224_vm0, %v219_v1, 0  ;;  %v639_v39 = vld [vmem:[%s3696_s1 + $0xe0] sm:$0xff]  ;;  %v637_v40 = vld [vmem:[%s3696_s1 + $0xd0] sm:$0xff]  ;;  %v2423_v41 = vand.u32 4294901760, %v641_v38 }
   0xe   : > { %s3802_s12 = smov (!%p202_p4, %s2321_s12), 1  ;;  %v2377_v4 = vand.u32 4294901760, %v226_v2  ;;  %v2379_v5 = vand.u32 4294901760, %v229_v3  ;;  %v2425_v42 = vand.u32 4294901760, %v639_v39  ;;  %v2427_v43 = vand.u32 4294901760, %v637_v40  ;;  %v635_v44 = vld [vmem:[%s3696_s1 + $0xc0] sm:$0xff] }
   0xf   : > { %s2281_s20 = sshll.u32 %s3802_s12, 5  ;;  %v633_v45 = vld [vmem:[%s3696_s1 + $0xb0] sm:$0xff]  ;;  %v631_v46 = vld [vmem:[%s3696_s1 + $0xa0] sm:$0xff]  ;;  %v2438_v47 = vand.u32 4294901760, %v635_v44  ;;  %v2451_v52 = vsub.f32 %v641_v38, %v2423_v41 }
  0x10   : > { %v2383_v6 = vsub.f32 %v226_v2, %v2377_v4  ;;  %v2386_v7 = vsub.f32 %v229_v3, %v2379_v5  ;;  %s206_s23 = scalar_lea.vmem %s3697_s2, %s2281_s20  ;;  %v2440_v48 = vand.u32 4294901760, %v633_v45  ;;  %v2442_v49 = vand.u32 4294901760, %v631_v46  ;;  %v629_v50 = vld [vmem:[%s3696_s1 + $0x90] sm:$0xff]  ;;  %v627_v51 = vld [vmem:[%s3696_s1 + $0x80] sm:$0xff]  ;;  %s3680_s22 = scalar_lea.vmem %s3698_s3, %s2281_s20 }
  0x11   : > { %v222_v8 = vld [vmem:[%s206_s23 + $0x10] sm:$0xff]  ;;  %v220_v9 = vld [vmem:[%s206_s23] sm:$0xff]  ;;  %v223_v11 = vld [vmem:[%s206_s23 + $0x18] sm:$0xff]  ;;  %v2454_v53 = vsub.f32 %v639_v39, %v2425_v42  ;;  %v2457_v54 = vsub.f32 %v637_v40, %v2427_v43  ;;  %v2461_v55 = vand.u32 4294901760, %v629_v50  ;;  %v2464_v56 = vsub.f32 %v635_v44, %v2438_v47 }
  0x12   : > { %v2394_v10 = vand.u32 4294901760, %v2383_v6  ;;  %v245_v12 = vand.u32 4294901760, %v222_v8  ;;  %v247_v13 = vand.u32 4294901760, %v220_v9  ;;  %v435_v14 = vand.u32 4294901760, %v223_v11  ;;  %v221_v15 = vld [vmem:[%s206_s23 + $0x8] sm:$0xff]  ;;  %v613_v40 = vld [vmem:[%s3696_s1 + $0x10] sm:$0xff] }
  0x13   : > { %v2399_v17 = vand.u32 4294901760, %v2386_v7  ;;  %v437_v18 = vand.u32 4294901760, %v221_v15  ;;  %v2467_v57 = vsub.f32 %v633_v45, %v2440_v48  ;;  %v2470_v58 = vsub.f32 %v631_v46, %v2442_v49 }
  0x14   : > { %v252_v16 = vsub.f32 %v2383_v6, %v2394_v10  ;;  %246 = vmatpush.msra.mxu0 %v245_v12  ;;  %v281_v19 = vsub.f32 %v222_v8, %v245_v12  ;;  %v287_v20 = vsub.f32 %v220_v9, %v247_v13  ;;  %347 = vmatpush.msra.mxu3 %v245_v12  ;;  %v2472_v59 = vand.u32 4294901760, %v627_v51 }
  0x15   : > { %v471_v21 = vsub.f32 %v223_v11, %v435_v14  ;;  %v477_v23 = vsub.f32 %v221_v15, %v437_v18  ;;  %v260_v27 = vsub.f32 %v2386_v7, %v2399_v17  ;;  %v726_v60 = vand.u32 4294901760, %v2451_v52 }
  0x16   : > { %v253_v22 = vand.u32 4294901760, %v252_v16  ;;  %248 = vmatpush.msra.mxu0 %v247_v13  ;;  %317 = vmatpush.msra.mxu2 %v281_v19  ;;  %v282_v24 = vand.u32 4294901760, %v281_v19  ;;  %v288_v25 = vand.u32 4294901760, %v287_v20  ;;  %v732_v61 = vand.u32 4294901760, %v2454_v53 }
  0x17   : > { %v472_v26 = vand.u32 4294901760, %v471_v21  ;;  %349 = vmatpush.msra.mxu3 %v247_v13  ;;  %v478_v28 = vand.u32 4294901760, %v477_v23  ;;  %v2405_v36 = vand.u32 4294901760, %v260_v27  ;;  %v738_v62 = vand.u32 4294901760, %v2457_v54 }
  0x18   : > { %254 = vmatmul.f32.vlgmr.msra.gmra.mxu0 %v253_v22  ;;  %320 = vmatpush.msra.mxu2 %v287_v20  ;;  %v283_v29 = vsub.f32 %v281_v19, %v282_v24  ;;  %v289_v30 = vsub.f32 %v287_v20, %v288_v25  ;;  %v744_v63 = vand.u32 4294901760, %v2464_v56  ;;  %v750_v0 = vand.u32 4294901760, %v2467_v57 }
  0x19   : > { %353 = vmatmul.f32.vlgmr.msra.gmra.mxu3 %v2394_v10  ;;  %v473_v31 = vsub.f32 %v471_v21, %v472_v26  ;;  %323 = vmatmul.f32.vlgmr.msra.gmra.mxu2 %v2383_v6  ;;  %v479_v32 = vsub.f32 %v477_v23, %v478_v28  ;;  %v2483_v1 = vsub.f32 %v629_v50, %v2461_v55  ;;  %v756_v9 = vand.u32 4294901760, %v2470_v58 }
  0x1a   : > { %380 = vmatpush.msrb.mxu0 %v282_v24  ;;  %v284_v33 = vand.u32 4294901760, %v283_v29  ;;  %v290_v34 = vand.u32 4294901760, %v289_v30  ;;  %436 = vmatpush.msrb.mxu2 %v435_v14  ;;  %v727_v2 = vsub.f32 %v2451_v52, %v726_v60  ;;  %v733_v3 = vsub.f32 %v2454_v53, %v732_v61 }
  0x1b   : > { %v474_v35 = vand.u32 4294901760, %v473_v31  ;;  %v480_v37 = vand.u32 4294901760, %v479_v32  ;;  %v739_v8 = vsub.f32 %v2457_v54, %v738_v62  ;;  %v2500_v11 = vsub.f32 %v627_v51, %v2472_v59  ;;  %v611_v51 = vld [vmem:[%s3696_s1] sm:$0xff] }
  0x1c   : > { %384 = vmatpush.msrb.mxu0 %v288_v25  ;;  %285 = vmatpush.msra.mxu1 %v284_v33  ;;  %v728_v15 = vand.u32 4294901760, %v727_v2  ;;  %v734_v16 = vand.u32 4294901760, %v733_v3  ;;  %v751_v19 = vsub.f32 %v2467_v57, %v750_v0  ;;  %v762_v20 = vand.u32 4294901760, %v2483_v1 }
  0x1d   : > { %438 = vmatpush.msrb.mxu2 %v437_v18  ;;  %475 = vmatpush.msrb.mxu3 %v474_v35  ;;  %v768_v27 = vand.u32 4294901760, %v2500_v11 }
  0x1e   : > { %291 = vmatpush.msra.mxu1 %v290_v34  ;;  %507 = vmatpush.msra.mxu0 %v471_v21  ;;  %v619_v21 = vld [vmem:[%s3696_s1 + $0x40] sm:$0xff]  ;;  %v763_v33 = vsub.f32 %v2483_v1, %v762_v20  ;;  %v752_v35 = vand.u32 4294901760, %v751_v19 }
  0x1f   : > { %570 = vmatpush.msra.mxu2 %v472_v26  ;;  %293 = vmatmul.f32.vlgmr.msra.gmra.mxu1 %v2377_v4  ;;  %v757_v26 = vsub.f32 %v2470_v58, %v756_v9  ;;  %v2548_v32 = vand.u32 4294901760, %v619_v21  ;;  %v615_v34 = vld [vmem:[%s3696_s1 + $0x20] sm:$0xff]  ;;  %v769_v39 = vsub.f32 %v2500_v11, %v768_v27 }
  0x20   : > { %262 = vmatmul.f32.gmra.mxu0 %v2405_v36  ;;  %409 = vmatpush.msrb.mxu1 %v245_v12  ;;  %v625_v12 = vld [vmem:[%s3696_s1 + $0x70] sm:$0xff]  ;;  %v2578_v50 = vand.u32 4294901760, %v615_v34 }
  0x21   : > { %359 = vmatmul.f32.gmra.mxu3 %v2399_v17  ;;  %328 = vmatmul.f32.gmra.mxu2 %v2386_v7  ;;  %v758_v44 = vand.u32 4294901760, %v757_v26  ;;  %v2576_v46 = vsub.f32 %v619_v21, %v2548_v32 }
  0x22   : > { %481 = vmatpush.msrb.mxu3 %v480_v37  ;;  %411 = vmatpush.msrb.mxu1 %v247_v13  ;;  %v623_v13 = vld [vmem:[%s3696_s1 + $0x60] sm:$0xff] }
  0x23   : > { %574 = vmatpush.msra.mxu2 %v478_v28  ;;  %510 = vmatpush.msra.mxu0 %v477_v23  ;;  %v2526_v23 = vand.u32 4294901760, %v625_v12  ;;  %v2528_v24 = vand.u32 4294901760, %v623_v13  ;;  %v617_v28 = vld [vmem:[%s3696_s1 + $0x30] sm:$0xff] }
  0x24   : > { %599 = vmatpush.msra.mxu3 %v435_v14  ;;  %537 = vmatpush.msra.mxu1 %v435_v14  ;;  %v621_v14 = vld [vmem:[%s3696_s1 + $0x50] sm:$0xff]  ;;  %v2563_v38 = vand.u32 4294901760, %v617_v28 }
  0x25   : > { %v2530_v25 = vand.u32 4294901760, %v621_v14  ;;  %v2543_v30 = vsub.f32 %v625_v12, %v2526_v23  ;;  %v2546_v31 = vsub.f32 %v623_v13, %v2528_v24  ;;  %v770_v12 = vand.u32 4294901760, %v769_v39 }
  0x26   : > { %601 = vmatpush.msra.mxu3 %v437_v18  ;;  %539 = vmatpush.msra.mxu1 %v437_v18  ;;  %v745_v18 = vsub.f32 %v2464_v56, %v744_v63 }
  0x27   : > { %297 = vmatmul.f32.gmra.mxu1 %v2379_v5  ;;  %v2561_v37 = vsub.f32 %v621_v14, %v2530_v25  ;;  %v780_v45 = vand.u32 4294901760, %v2546_v31  ;;  %v792_v14 = vand.u32 4294901760, %v2576_v46 }
  0x28   : > { %386 = vmatmul.f32.vlgmr.msrb.gmra.mxu0 %v2377_v4  ;;  %v746_v29 = vand.u32 4294901760, %v745_v18 }
  0x29   : > { %483 = vmatmul.f32.vlgmr.msrb.gmra.mxu3 %v2377_v4  ;;  %444 = vmatmul.f32.vlgmr.msrb.gmra.mxu2 %v253_v22  ;;  %v740_v22 = vand.u32 4294901760, %v739_v8  ;;  %v786_v3 = vand.u32 4294901760, %v2561_v37  ;;  %v2591_v8 = vsub.f32 %v617_v28, %v2563_v38  ;;  %v781_v13 = vsub.f32 %v2546_v31, %v780_v45 }
  0x2a   : > { %889 = vmatpush.msrb.mxu3 %v2423_v41  ;;  %676 = vmatpush.msrb.mxu0 %v2423_v41  ;;  %v793_v28 = vsub.f32 %v2576_v46, %v792_v14 }
  0x2b   : > { %831 = vmatpush.msrb.mxu2 %v2451_v52  ;;  %v787_v19 = vsub.f32 %v2561_v37, %v786_v3  ;;  %v798_v21 = vand.u32 4294901760, %v2591_v8  ;;  %v782_v26 = vand.u32 4294901760, %v781_v13 }
  0x2c   : > { %891 = vmatpush.msrb.mxu3 %v2425_v42  ;;  %678 = vmatpush.msrb.mxu0 %v2425_v42 }
  0x2d   : > { %834 = vmatpush.msrb.mxu2 %v2454_v53 }
  0x2e   : > { %893 = vmatpush.msrb.mxu3 %v2427_v43  ;;  %680 = vmatpush.msrb.mxu0 %v2427_v43 }
  0x2f   : > { %413 = vmatmul.f32.vlgmr.msrb.gmra.mxu1 %v2377_v4  ;;  %837 = vmatpush.msrb.mxu2 %v2457_v54 }
  0x30   : > { %390 = vmatmul.f32.gmra.mxu0 %v2379_v5  ;;  %895 = vmatpush.msrb.mxu3 %v2438_v47 }
  0x31   : > { %487 = vmatmul.f32.gmra.mxu3 %v2379_v5  ;;  %452 = vmatmul.f32.gmra.mxu2 %v2405_v36  ;;  %v774_v36 = vand.u32 4294901760, %v2543_v30 }
  0x32   : > { %729 = vmatpush.msrb.mxu1 %v728_v15  ;;  %840 = vmatpush.msrb.mxu2 %v2464_v56  ;;  %v2603_v15 = vsub.f32 %v615_v34, %v2578_v50 }
  0x33   : > { %897 = vmatpush.msrb.mxu3 %v2440_v48  ;;  %682 = vmatpush.msrb.mxu0 %v2438_v47  ;;  %v775_v2 = vsub.f32 %v2543_v30, %v774_v36 }
  0x34   : > { %735 = vmatpush.msrb.mxu1 %v734_v16  ;;  %843 = vmatpush.msrb.mxu2 %v2467_v57  ;;  %v2605_v16 = vand.u32 4294901760, %v611_v51 }
  0x35   : > { %899 = vmatpush.msrb.mxu3 %v2442_v49  ;;  %684 = vmatpush.msrb.mxu0 %v2440_v48  ;;  %v776_v18 = vand.u32 4294901760, %v775_v2 }
  0x36   : > { %741 = vmatpush.msrb.mxu1 %v740_v22  ;;  %846 = vmatpush.msrb.mxu2 %v2470_v58 }
  0x37   : > { %417 = vmatmul.f32.gmra.mxu1 %v2379_v5  ;;  %901 = vmatpush.msrb.mxu3 %v2461_v55 }
  0x38   : > { %513 = vmatmul.f32.vlgmr.msra.gmra.mxu0 %v2383_v6  ;;  %747 = vmatpush.msrb.mxu1 %v746_v29  ;;  %v764_v6 = vand.u32 4294901760, %v763_v33  ;;  %v804_v29 = vand.u32 4294901760, %v2603_v15  ;;  %v2625_v33 = vsub.f32 %v611_v51, %v2605_v16 }
  0x39   : > { %603 = vmatmul.f32.vlgmr.msra.gmra.mxu3 %v2377_v4  ;;  %576 = vmatmul.f32.vlgmr.msra.gmra.mxu2 %v2377_v4  ;;  %v2593_v4 = vand.u32 4294901760, %v613_v40 }
  0x3a   : > { %753 = vmatpush.msrb.mxu1 %v752_v35  ;;  %849 = vmatpush.msrb.mxu2 %v2483_v1  ;;  %v794_v35 = vand.u32 4294901760, %v793_v28  ;;  %v816_v39 = vand.u32 4294901760, %v2625_v33 }
  0x3b   : > { %686 = vmatpush.msrb.mxu0 %v2442_v49  ;;  %903 = vmatpush.msrb.mxu3 %v2472_v59  ;;  %v2615_v22 = vsub.f32 %v613_v40, %v2593_v4 }
  0x3c   : > { %759 = vmatpush.msrb.mxu1 %v758_v44  ;;  %852 = vmatpush.msrb.mxu2 %v2500_v11  ;;  %v817_v51 = vsub.f32 %v2625_v33, %v816_v39 }
  0x3d   : > { %688 = vmatpush.msrb.mxu0 %v2461_v55  ;;  %905 = vmatpush.msrb.mxu3 %v2526_v23  ;;  %v810_v34 = vand.u32 4294901760, %v2615_v22 }
  0x3e   : > { %765 = vmatpush.msrb.mxu1 %v764_v6  ;;  %855 = vmatpush.msrb.mxu2 %v2543_v30 }
  0x3f   : > { %543 = vmatmul.f32.vlgmr.msra.gmra.mxu1 %v2394_v10  ;;  %v788_v10 = vand.u32 4294901760, %v787_v19  ;;  %690 = vmatpush.msrb.mxu0 %v2472_v59  ;;  %v811_v44 = vsub.f32 %v2615_v22, %v810_v34 }
  0x40   : > { %518 = vmatmul.f32.gmra.mxu0 %v2386_v7  ;;  %771 = vmatpush.msrb.mxu1 %v770_v12  ;;  %v799_v7 = vsub.f32 %v2591_v8, %v798_v21 }
  0x41   : > { %607 = vmatmul.f32.gmra.mxu3 %v2379_v5  ;;  %580 = vmatmul.f32.gmra.mxu2 %v2379_v5  ;;  %v805_v5 = vsub.f32 %v2603_v15, %v804_v29  ;;  %v812_v2 = vand.u32 4294901760, %v811_v44 }
  0x42   : > { %777 = vmatpush.msrb.mxu1 %v776_v18  ;;  %858 = vmatpush.msrb.mxu2 %v2546_v31  ;;  %v800_v40 = vand.u32 4294901760, %v799_v7  ;;  %v655_v18 = vld [vmem:[%s3696_s1 + $0x160] sm:$0xff] }
  0x43   : > { %907 = vmatpush.msrb.mxu3 %v2528_v24  ;;  %692 = vmatpush.msrb.mxu0 %v2526_v23  ;;  %v806_v6 = vand.u32 4294901760, %v805_v5  ;;  %v651_v5 = vld [vmem:[%s3696_s1 + $0x140] sm:$0xff] }
  0x44   : > { %783 = vmatpush.msrb.mxu1 %v782_v26  ;;  %861 = vmatpush.msrb.mxu2 %v2561_v37  ;;  %v2851_v44 = vand.u32 4294901760, %v651_v5 }
  0x45   : > { %909 = vmatpush.msrb.mxu3 %v2530_v25  ;;  %694 = vmatpush.msrb.mxu0 %v2528_v24 }
  0x46   : > { %789 = vmatpush.msrb.mxu1 %v788_v10  ;;  %864 = vmatpush.msrb.mxu2 %v2576_v46 }
  0x47   : > { %549 = vmatmul.f32.gmra.mxu1 %v2399_v17  ;;  %911 = vmatpush.msrb.mxu3 %v2548_v32  ;;  %v818_v17 = vand.u32 4294901760, %v817_v51 }
  0x48   : > { %795 = vmatpush.msrb.mxu1 %v794_v35  ;;  %867 = vmatpush.msrb.mxu2 %v2591_v8 }
  0x49   : > { %696 = vmatpush.msrb.mxu0 %v2530_v25  ;;  %913 = vmatpush.msrb.mxu3 %v2563_v38 }
  0x4a   : > { %801 = vmatpush.msrb.mxu1 %v800_v40  ;;  %870 = vmatpush.msrb.mxu2 %v2603_v15 }
  0x4b   : > { %698 = vmatpush.msrb.mxu0 %v2548_v32  ;;  %915 = vmatpush.msrb.mxu3 %v2578_v50 }
  0x4c   : > { %807 = vmatpush.msrb.mxu1 %v806_v6  ;;  %873 = vmatpush.msrb.mxu2 %v2615_v22  ;;  %v2824_v22 = vand.u32 4294901760, %v655_v18 }
  0x4d   : > { %700 = vmatpush.msrb.mxu0 %v2563_v38  ;;  %917 = vmatpush.msrb.mxu3 %v2593_v4 }
  0x4e   : > { %813 = vmatpush.msrb.mxu1 %v812_v2  ;;  %876 = vmatpush.msrb.mxu2 %v2625_v33  ;;  %v649_v2 = vld [vmem:[%s3696_s1 + $0x130] sm:$0xff] }
  0x4f   : > { %702 = vmatpush.msrb.mxu0 %v2578_v50  ;;  %919 = vmatpush.msrb.mxu3 %v2605_v16 }
  0x50   : > { %819 = vmatpush.msrb.mxu1 %v818_v17 }
  0x51   : > { %704 = vmatpush.msrb.mxu0 %v2593_v4 }
  0x52   : > { %1007 = vmatpush.msra.mxu1 %v2423_v41  ;;  %v673_v41 = vld [vmem:[%s3696_s1 + $0x1f0] sm:$0xff] }
  0x53   : > { %706 = vmatpush.msrb.mxu0 %v2605_v16 }
  0x54   : > { %1009 = vmatpush.msra.mxu1 %v2425_v42  ;;  %v2708_v42 = vand.u32 4294901760, %v673_v41 }
  0x55   : > { %936 = vmatpush.msra.mxu0 %v726_v60  ;;  %v665_v60 = vld [vmem:[%s3696_s1 + $0x1b0] sm:$0xff] }
  0x56   : > { %1011 = vmatpush.msra.mxu1 %v2427_v43  ;;  %v671_v43 = vld [vmem:[%s3696_s1 + $0x1e0] sm:$0xff]  ;;  %1048 = vmatpush.msra.mxu2 %v2708_v42 }
  0x57   : > { %940 = vmatpush.msra.mxu0 %v732_v61 }
  0x58   : > { %1013 = vmatpush.msra.mxu1 %v2438_v47  ;;  %v2718_v47 = vsub.f32 %v673_v41, %v2708_v42 }
  0x59   : > { %944 = vmatpush.msra.mxu0 %v738_v62 }
  0x5a   : > { %1015 = vmatpush.msra.mxu1 %v2440_v48  ;;  %v2720_v48 = vand.u32 4294901760, %v671_v43  ;;  %v1098_v52 = vand.u32 4294901760, %v2718_v47 }
  0x5b   : > { %948 = vmatpush.msra.mxu0 %v744_v63 }
  0x5c   : > { %1017 = vmatpush.msra.mxu1 %v2442_v49  ;;  %v669_v49 = vld [vmem:[%s3696_s1 + $0x1d0] sm:$0xff]  ;;  %1050 = vmatpush.msra.mxu2 %v2720_v48  ;;  %v2733_v54 = vsub.f32 %v671_v43, %v2720_v48  ;;  %v1099_v56 = vsub.f32 %v2718_v47, %v1098_v52 }
  0x5d   : > { %952 = vmatpush.msra.mxu0 %v750_v0  ;;  %v2730_v53 = vand.u32 4294901760, %v669_v49  ;;  %v2760_v0 = vand.u32 4294901760, %v665_v60 }
  0x5e   : > { %1019 = vmatpush.msra.mxu1 %v2461_v55  ;;  %v667_v55 = vld [vmem:[%s3696_s1 + $0x1c0] sm:$0xff]  ;;  %v1104_v57 = vand.u32 4294901760, %v2733_v54  ;;  %v1100_v61 = vand.u32 4294901760, %v1099_v56 }
  0x5f   : > { %956 = vmatpush.msra.mxu0 %v756_v9  ;;  %1052 = vmatpush.msra.mxu2 %v2730_v53  ;;  %v2745_v58 = vand.u32 4294901760, %v667_v55  ;;  %v663_v9 = vld [vmem:[%s3696_s1 + $0x1a0] sm:$0xff] }
  0x60   : > { %1021 = vmatpush.msra.mxu1 %v2472_v59  ;;  %v2748_v59 = vsub.f32 %v669_v49, %v2730_v53  ;;  %v1105_v62 = vsub.f32 %v2733_v54, %v1104_v57  ;;  %1101 = vmatpush.msra.mxu3 %v1100_v61  ;;  %v2864_v49 = vand.u32 4294901760, %v649_v2  ;;  %v647_v56 = vld [vmem:[%s3696_s1 + $0x120] sm:$0xff] }
  0x61   : > { %960 = vmatpush.msra.mxu0 %v762_v20  ;;  %1054 = vmatpush.msra.mxu2 %v2745_v58  ;;  %v2763_v1 = vsub.f32 %v667_v55, %v2745_v58  ;;  %v2867_v55 = vsub.f32 %v651_v5, %v2851_v44 }
  0x62   : > { %1023 = vmatpush.msra.mxu1 %v2526_v23  ;;  %v1110_v63 = vand.u32 4294901760, %v2748_v59  ;;  %v1106_v11 = vand.u32 4294901760, %v1105_v62  ;;  %v2772_v23 = vand.u32 4294901760, %v663_v9  ;;  %v2876_v62 = vand.u32 4294901760, %v647_v56 }
  0x63   : > { %964 = vmatpush.msra.mxu0 %v768_v27  ;;  %1056 = vmatpush.msra.mxu2 %v2760_v0  ;;  %v661_v27 = vld [vmem:[%s3696_s1 + $0x190] sm:$0xff] }
  0x64   : > { %1025 = vmatpush.msra.mxu1 %v2528_v24  ;;  %v1111_v20 = vsub.f32 %v2748_v59, %v1110_v63  ;;  %v2775_v24 = vsub.f32 %v665_v60, %v2760_v0  ;;  %1107 = vmatpush.msra.mxu3 %v1106_v11  ;;  %v3703_v11 = vand.u32 4294901760, %v2867_v55 }
  0x65   : > { %968 = vmatpush.msra.mxu0 %v774_v36  ;;  %1058 = vmatpush.msra.mxu2 %v2772_v23  ;;  %v2786_v36 = vsub.f32 %v663_v9, %v2772_v23  ;;  %v2879_v9 = vsub.f32 %v649_v2, %v2864_v49 }
  0x66   : > { %1027 = vmatpush.msra.mxu1 %v2530_v25  ;;  %v1116_v25 = vand.u32 4294901760, %v2763_v1  ;;  %v1112_v30 = vand.u32 4294901760, %v1111_v20  ;;  %v1122_v31 = vand.u32 4294901760, %v2775_v24  ;;  %v645_v20 = vld [vmem:[%s3696_s1 + $0x110] sm:$0xff] }
  0x67   : > { %972 = vmatpush.msra.mxu0 %v780_v45  ;;  %v1128_v46 = vand.u32 4294901760, %v2786_v36 }
  0x68   : > { %1029 = vmatpush.msra.mxu1 %v2548_v32  ;;  %v2783_v32 = vand.u32 4294901760, %v661_v27  ;;  %v1117_v37 = vsub.f32 %v2763_v1, %v1116_v25  ;;  %1113 = vmatpush.msra.mxu3 %v1112_v30  ;;  %v1123_v45 = vsub.f32 %v2775_v24, %v1122_v31  ;;  %v3701_v30 = vand.u32 4294901760, %v2879_v9 }
  0x69   : > { %976 = vmatpush.msra.mxu0 %v786_v3  ;;  %v1129_v13 = vsub.f32 %v2786_v36, %v1128_v46 }
  0x6a   : > { %1031 = vmatpush.msra.mxu1 %v2563_v38  ;;  %v659_v38 = vld [vmem:[%s3696_s1 + $0x180] sm:$0xff]  ;;  %1060 = vmatpush.msra.mxu2 %v2783_v32  ;;  %v2802_v3 = vsub.f32 %v661_v27, %v2783_v32  ;;  %v1118_v8 = vand.u32 4294901760, %v1117_v37  ;;  %v1124_v12 = vand.u32 4294901760, %v1123_v45  ;;  %v2887_v37 = vand.u32 4294901760, %v645_v20 }
  0x6b   : > { %980 = vmatpush.msra.mxu0 %v792_v14  ;;  %v1130_v19 = vand.u32 4294901760, %v1129_v13  ;;  %v1165_v45 = vsub.f32 %v2867_v55, %v3703_v11 }
  0x6c   : > { %1033 = vmatpush.msra.mxu1 %v2578_v50  ;;  %v2799_v50 = vand.u32 4294901760, %v659_v38  ;;  %v1134_v14 = vand.u32 4294901760, %v2802_v3  ;;  %1119 = vmatpush.msra.mxu3 %v1118_v8  ;;  %v1171_v8 = vsub.f32 %v2879_v9, %v3701_v30 }
  0x6d   : > { %984 = vmatpush.msra.mxu0 %v798_v21  ;;  %v1166_v13 = vand.u32 4294901760, %v1165_v45 }
  0x6e   : > { %1035 = vmatpush.msra.mxu1 %v2593_v4  ;;  %v657_v4 = vld [vmem:[%s3696_s1 + $0x170] sm:$0xff]  ;;  %1062 = vmatpush.msra.mxu2 %v2799_v50  ;;  %v1135_v21 = vsub.f32 %v2802_v3, %v1134_v14 }
  0x6f   : > { %988 = vmatpush.msra.mxu0 %v804_v29  ;;  %v2812_v15 = vand.u32 4294901760, %v657_v4  ;;  %1125 = vmatpush.msra.mxu3 %v1124_v12  ;;  %v653_v29 = vld [vmem:[%s3696_s1 + $0x150] sm:$0xff]  ;;  %v643_v12 = vld [vmem:[%s3696_s1 + $0x100] sm:$0xff] }
  0x70   : > { %1037 = vmatpush.msra.mxu1 %v2605_v16  ;;  %v2815_v16 = vsub.f32 %v659_v38, %v2799_v50  ;;  %v1136_v33 = vand.u32 4294901760, %v1135_v21  ;;  %v2835_v7 = vand.u32 4294901760, %v653_v29  ;;  %v2890_v38 = vsub.f32 %v647_v56, %v2876_v62 }
  0x71   : > { %992 = vmatpush.msra.mxu0 %v810_v34  ;;  %1064 = vmatpush.msra.mxu2 %v2812_v15  ;;  %v2827_v26 = vsub.f32 %v657_v4, %v2812_v15  ;;  %v2838_v34 = vsub.f32 %v655_v18, %v2824_v22  ;;  %v2903_v18 = vand.u32 4294901760, %v643_v12  ;;  %v1172_v21 = vand.u32 4294901760, %v1171_v8 }
  0x72   : > { %v1140_v28 = vand.u32 4294901760, %v2815_v16  ;;  %1131 = vmatpush.msra.mxu3 %v1130_v19  ;;  %v2854_v6 = vsub.f32 %v653_v29, %v2835_v7  ;;  %v3700_v4 = vand.u32 4294901760, %v2890_v38  ;;  %v2906_v19 = vsub.f32 %v645_v20, %v2887_v37 }
  0x73   : > { %996 = vmatpush.msra.mxu0 %v816_v39  ;;  %1066 = vmatpush.msra.mxu2 %v2824_v22  ;;  %v1146_v10 = vand.u32 4294901760, %v2827_v26  ;;  %v3705_v40 = vand.u32 4294901760, %v2838_v34 }
  0x74   : > { %v1141_v35 = vsub.f32 %v2815_v16, %v1140_v28  ;;  %1137 = vmatpush.msra.mxu3 %v1136_v33  ;;  %v3704_v43 = vand.u32 4294901760, %v2854_v6  ;;  %v1177_v29 = vsub.f32 %v2890_v38, %v3700_v4  ;;  %v3699_v33 = vand.u32 4294901760, %v2906_v19 }
  0x75   : > { %v1147_v39 = vsub.f32 %v2827_v26, %v1146_v10  ;;  %1068 = vmatpush.msra.mxu2 %v2835_v7  ;;  %v1153_v41 = vsub.f32 %v2838_v34, %v3705_v40 }
  0x76   : > { %v1142_v51 = vand.u32 4294901760, %v1141_v35  ;;  %v1159_v61 = vsub.f32 %v2854_v6, %v3704_v43  ;;  %v2914_v35 = vsub.f32 %v643_v12, %v2903_v18  ;;  %v1178_v5 = vand.u32 4294901760, %v1177_v29 }
  0x77   : > { %v1148_v17 = vand.u32 4294901760, %v1147_v39  ;;  %1070 = vmatpush.msra.mxu2 %v2851_v44  ;;  %v1154_v60 = vand.u32 4294901760, %v1153_v41  ;;  %v1183_v39 = vsub.f32 %v2906_v19, %v3699_v33 }
  0x78   : > { %1143 = vmatpush.msra.mxu3 %v1142_v51  ;;  %v1160_v27 = vand.u32 4294901760, %v1159_v61  ;;  %v3702_v51 = vand.u32 4294901760, %v2914_v35 }
  0x79   : > { %1072 = vmatpush.msra.mxu2 %v2864_v49  ;;  %v1184_v2 = vand.u32 4294901760, %v1183_v39 }
  0x7a   : > { %1149 = vmatpush.msra.mxu3 %v1148_v17  ;;  %v1189_v17 = vsub.f32 %v2914_v35, %v3702_v51 }
  0x7b   : > { %1074 = vmatpush.msra.mxu2 %v2876_v62 }
  0x7c   : > { %1155 = vmatpush.msra.mxu3 %v1154_v60  ;;  %v1190_v41 = vand.u32 4294901760, %v1189_v17 }
  0x7d   : > { %1076 = vmatpush.msra.mxu2 %v2887_v37 }
  0x7e   : > { %1161 = vmatpush.msra.mxu3 %v1160_v27 }
  0x7f   : > { %1078 = vmatpush.msra.mxu2 %v2903_v18 }
  0x80   : > { %1167 = vmatpush.msra.mxu3 %v1166_v13 }
  0x82   : > { %1173 = vmatpush.msra.mxu3 %v1172_v21 }
  0x84   : > { %1179 = vmatpush.msra.mxu3 %v1178_v5 }
  0x86   : > { %1185 = vmatpush.msra.mxu3 %v1184_v2 }
  0x88   : > { %1191 = vmatpush.msra.mxu3 %v1190_v41 }
  0x95   : > { %v255_v56 = vpop.f32.mrf.mxu0 }
  0x9c   : > { %v354_v60 = vpop.f32.mrf.mxu3  ;;  %v294_v20 = vpop.f32.mrf.mxu1 }
  0x9d   : > { %v263_v61 = vpop.f32.mrf.mxu0  ;;  %v324_v27 = vpop.f32.mrf.mxu2  ;;  %v295_v45 = vadd.f32 %v294_v20, %v255_v56 }
  0x9f   : > { %v325_v21 = vadd.f32 %v324_v27, %v295_v45 }
  0xa1   : > { %v355_v5 = vadd.f32 %v354_v60, %v325_v21 }
  0xa4   : > { %v360_v8 = vpop.f32.mrf.mxu3  ;;  %v298_v12 = vpop.f32.mrf.mxu1 }
  0xa5   : > { %v387_v13 = vpop.f32.mrf.mxu0  ;;  %v329_v29 = vpop.f32.mrf.mxu2  ;;  %v299_v39 = vadd.f32 %v298_v12, %v263_v61 }
  0xa6   : > { %v388_v33 = vadd.f32 %v387_v13, %v355_v5 }
  0xa7   : > { %v330_v2 = vadd.f32 %v329_v29, %v299_v39  ;;  %v638_v29 = vld [vmem:[%s3696_s1 + $0xd8] sm:$0xff] }
  0xa9   : > { %v361_v43 = vadd.f32 %v360_v8, %v330_v2 }
  0xac   : > { %v484_v4 = vpop.f32.mrf.mxu3  ;;  %v414_v51 = vpop.f32.mrf.mxu1 }
  0xad   : > { %v391_v30 = vpop.f32.mrf.mxu0  ;;  %v415_v17 = vadd.f32 %v414_v51, %v388_v33  ;;  %v445_v11 = vpop.f32.mrf.mxu2 }
  0xae   : > { %v392_v56 = vadd.f32 %v391_v30, %v361_v43  ;;  %v485_v20 = vadd.f32 %v484_v4, %v445_v11 }
  0xaf   : > { %v2923_v41 = vand.u32 4294901760, %v415_v17 }
  0xb1   : > { %v2926_v40 = vsub.f32 %v415_v17, %v2923_v41  ;;  %821 = vmatmul.f32.vlgmr.msrb.gmra.mxu1 %v2923_v41 }
  0xb2   : > { %1261 = vmatpush.msrb.mxu1 %v2708_v42 }
  0xb3   : > { %879 = vmatmul.f32.vlgmr.msrb.gmra.mxu2 %v2926_v40  ;;  %v2932_v60 = vand.u32 4294901760, %v2926_v40 }
  0xb4   : > { %v488_v61 = vpop.f32.mrf.mxu3  ;;  %1263 = vmatpush.msrb.mxu1 %v2720_v48  ;;  %1308 = vmatpush.msrb.mxu2 %v1098_v52  ;;  %v418_v33 = vpop.f32.mrf.mxu1 }
  0xb5   : > { %v514_v51 = vpop.f32.mrf.mxu0  ;;  %v419_v27 = vadd.f32 %v418_v33, %v392_v56  ;;  %923 = vmatmul.f32.vlgmr.msrb.gmra.mxu3 %v2932_v60  ;;  %v453_v45 = vpop.f32.mrf.mxu2  ;;  %v710_v43 = vsub.f32 %v2926_v40, %v2932_v60  ;;  %v634_v56 = vld [vmem:[%s3696_s1 + $0xb8] sm:$0xff] }
  0xb6   : > { %1265 = vmatpush.msrb.mxu1 %v2730_v53  ;;  %1312 = vmatpush.msrb.mxu2 %v1104_v57  ;;  %v515_v4 = vadd.f32 %v514_v51, %v485_v20 }
  0xb7   : > { %v2943_v30 = vand.u32 4294901760, %v419_v27  ;;  %1379 = vmatpush.msrb.mxu3 %v2708_v42  ;;  %v2946_v52 = vand.u32 4294901760, %v710_v43 }
  0xb8   : > { %1267 = vmatpush.msrb.mxu1 %v2745_v58  ;;  %1316 = vmatpush.msrb.mxu2 %v1110_v63  ;;  %v489_v63 = vadd.f32 %v488_v61, %v453_v45  ;;  %v632_v45 = vld [vmem:[%s3696_s1 + $0xa8] sm:$0xff] }
  0xb9   : > { %v2952_v11 = vsub.f32 %v419_v27, %v2943_v30  ;;  %1381 = vmatpush.msrb.mxu3 %v2720_v48  ;;  %712 = vmatmul.f32.vlgmr.msrb.gmra.mxu0 %v2946_v52 }
  0xba   : > { %825 = vmatmul.f32.gmra.mxu1 %v2943_v30  ;;  %1203 = vmatpush.msrb.mxu0 %v2718_v47 }
  0xbb   : > { %1269 = vmatpush.msrb.mxu1 %v2760_v0  ;;  %1320 = vmatpush.msrb.mxu2 %v1116_v25  ;;  %v2962_v42 = vand.u32 4294901760, %v2952_v11 }
  0xbc   : > { %1383 = vmatpush.msrb.mxu3 %v2730_v53  ;;  %884 = vmatmul.f32.gmra.mxu2 %v2952_v11  ;;  %v544_v48 = vpop.f32.mrf.mxu1  ;;  %v604_v57 = vpop.f32.mrf.mxu3 }
  0xbd   : > { %1206 = vmatpush.msrb.mxu0 %v2733_v54  ;;  %1271 = vmatpush.msrb.mxu1 %v2772_v23  ;;  %v545_v47 = vadd.f32 %v544_v48, %v515_v4  ;;  %v577_v8 = vpop.f32.mrf.mxu2  ;;  %v718_v12 = vsub.f32 %v2952_v11, %v2962_v42  ;;  %v519_v53 = vpop.f32.mrf.mxu0  ;;  %v642_v54 = vld [vmem:[%s3696_s1 + $0xf8] sm:$0xff]  ;;  %v3743_v4 = vand.u32 4294901760, %v2867_v55 }
  0xbe   : > { %1324 = vmatpush.msrb.mxu2 %v1122_v31  ;;  %1385 = vmatpush.msrb.mxu3 %v2745_v58  ;;  %v520_v31 = vadd.f32 %v519_v53, %v489_v63 }
  0xbf   : > { %929 = vmatmul.f32.gmra.mxu3 %v2962_v42  ;;  %1209 = vmatpush.msrb.mxu0 %v2748_v59  ;;  %v578_v25 = vadd.f32 %v577_v8, %v545_v47  ;;  %v2975_v13 = vand.u32 4294901760, %v718_v12  ;;  %v3084_v47 = vand.u32 4294901760, %v632_v45 }
  0xc0   : > { %1273 = vmatpush.msrb.mxu1 %v2783_v32  ;;  %1328 = vmatpush.msrb.mxu2 %v1128_v46  ;;  %v2992_v46 = vand.u32 4294901760, %v642_v54 }
  0xc1   : > { %1387 = vmatpush.msrb.mxu3 %v2760_v0  ;;  %1212 = vmatpush.msrb.mxu0 %v2763_v1  ;;  %v605_v58 = vadd.f32 %v604_v57, %v578_v25  ;;  %v640_v0 = vld [vmem:[%s3696_s1 + $0xe8] sm:$0xff] }
  0xc2   : > { %1275 = vmatpush.msrb.mxu1 %v2799_v50  ;;  %1332 = vmatpush.msrb.mxu2 %v1134_v14  ;;  %v3010_v5 = vand.u32 4294901760, %v640_v0  ;;  %v3019_v2 = vsub.f32 %v642_v54, %v2992_v46 }
  0xc3   : > { %1389 = vmatpush.msrb.mxu3 %v2772_v23  ;;  %v2989_v59 = vand.u32 4294901760, %v605_v58  ;;  %720 = vmatmul.f32.gmra.mxu0 %v2975_v13 }
  0xc4   : > { %1039 = vmatmul.f32.vlgmr.msra.gmra.mxu1 %v2923_v41  ;;  %1215 = vmatpush.msrb.mxu0 %v2775_v24  ;;  %v550_v1 = vpop.f32.mrf.mxu1  ;;  %v608_v24 = vpop.f32.mrf.mxu3  ;;  %v3721_v33 = vand.u32 4294901760, %v3019_v2 }
  0xc5   : > { %v3000_v21 = vsub.f32 %v605_v58, %v2989_v59  ;;  %1277 = vmatpush.msrb.mxu1 %v2812_v15  ;;  %1336 = vmatpush.msrb.mxu2 %v1140_v28  ;;  %v551_v23 = vadd.f32 %v550_v1, %v520_v31  ;;  %v581_v14 = vpop.f32.mrf.mxu2  ;;  %v3746_v58 = vand.u32 4294901760, %v2890_v38 }
  0xc6   : > { %1391 = vmatpush.msrb.mxu3 %v2783_v32  ;;  %1218 = vmatpush.msrb.mxu0 %v2786_v36  ;;  %v3023_v32 = vand.u32 4294901760, %v638_v29  ;;  %v636_v36 = vld [vmem:[%s3696_s1 + $0xc8] sm:$0xff]  ;;  %v1471_v48 = vsub.f32 %v3019_v2, %v3721_v33 }
  0xc7   : > { %3737 = vst [vmem:[#allocation2_spill] sm:$0xff] %v3000_v21  ;;  %v3013_v39 = vand.u32 4294901760, %v3000_v21  ;;  %1279 = vmatpush.msrb.mxu1 %v2824_v22  ;;  %1340 = vmatpush.msrb.mxu2 %v1146_v10  ;;  %v582_v28 = vadd.f32 %v581_v14, %v551_v23  ;;  %v3739_v10 = vand.u32 4294901760, %v2838_v34  ;;  %v3046_v51 = vand.u32 4294901760, %v636_v36 }
  0xc8   : > { %1393 = vmatpush.msrb.mxu3 %v2799_v50  ;;  %1221 = vmatpush.msrb.mxu0 %v2802_v3  ;;  %v3036_v3 = vsub.f32 %v640_v0, %v3010_v5  ;;  %v3052_v20 = vsub.f32 %v638_v29, %v3023_v32  ;;  %v1472_v25 = vand.u32 4294901760, %v1471_v48  ;;  %v3115_v0 = vsub.f32 %v632_v45, %v3084_v47 }
  0xc9   : > { %3738 = vst [vmem:[#allocation3_spill] sm:$0xff] %v3013_v39  ;;  %1193 = vmatmul.f32.vlgmr.msra.gmra.mxu3 %v2989_v59  ;;  %1281 = vmatpush.msrb.mxu1 %v2835_v7  ;;  %v609_v17 = vadd.f32 %v608_v24, %v582_v28  ;;  %v1082_v50 = vsub.f32 %v3000_v21, %v3013_v39  ;;  %v3747_v14 = vand.u32 4294901760, %v2906_v19 }
  0xca   : > { %1344 = vmatpush.msrb.mxu2 %v3739_v10  ;;  %1395 = vmatpush.msrb.mxu3 %v2812_v15  ;;  %v3741_v15 = vand.u32 4294901760, %v2854_v6  ;;  %v3719_v43 = vand.u32 4294901760, %v3036_v3  ;;  %v3076_v57 = vsub.f32 %v636_v36, %v3046_v51  ;;  %v3718_v63 = vand.u32 4294901760, %v3052_v20  ;;  %v622_v10 = vld [vmem:[%s3696_s1 + $0x58] sm:$0xff] }
  0xcb   : > { %1224 = vmatpush.msrb.mxu0 %v2815_v16  ;;  %1283 = vmatpush.msrb.mxu1 %v2851_v44  ;;  %v3043_v61 = vand.u32 4294901760, %v609_v17  ;;  %v3059_v16 = vand.u32 4294901760, %v634_v56 }
  0xcc   : > { %1348 = vmatpush.msrb.mxu2 %v3741_v15  ;;  %1397 = vmatpush.msrb.mxu3 %v2824_v22  ;;  %v3066_v22 = vand.u32 4294901760, %v1082_v50  ;;  %v3715_v54 = vand.u32 4294901760, %v3076_v57  ;;  %v1483_v31 = vsub.f32 %v3052_v20, %v3718_v63  ;;  %v3748_v50 = vand.u32 4294901760, %v2914_v35  ;;  %v668_v63 = vld [vmem:[%s3696_s1 + $0x1c8] sm:$0xff] }
  0xcd   : > { %3740 = vst [vmem:[#allocation4_spill] sm:$0xff] %v3043_v61  ;;  %v3055_v27 = vsub.f32 %v609_v17, %v3043_v61  ;;  %998 = vmatmul.f32.vlgmr.msra.gmra.mxu0 %v2923_v41  ;;  %1043 = vmatmul.f32.gmra.mxu1 %v2943_v30  ;;  %v3093_v12 = vsub.f32 %v634_v56, %v3059_v16  ;;  %v3711_v17 = vand.u32 4294901760, %v3115_v0 }
  0xce   : > { %1227 = vmatpush.msrb.mxu0 %v2827_v26  ;;  %1285 = vmatpush.msrb.mxu1 %v2864_v49  ;;  %v630_v26 = vld [vmem:[%s3696_s1 + $0x98] sm:$0xff]  ;;  %v1489_v28 = vsub.f32 %v3076_v57, %v3715_v54 }
  0xcf   : > { %3742 = vst [vmem:[#allocation5_spill] sm:$0xff] %v3055_v27  ;;  %1352 = vmatpush.msrb.mxu2 %v3743_v4  ;;  %1399 = vmatpush.msrb.mxu3 %v2835_v7  ;;  %v3744_v7 = vand.u32 4294901760, %v2879_v9  ;;  %v3090_v8 = vand.u32 4294901760, %v3055_v27  ;;  %v3100_v53 = vand.u32 4294901760, %v630_v26 }
  0xd0   : > { %1230 = vmatpush.msrb.mxu0 %v2838_v34  ;;  %1287 = vmatpush.msrb.mxu1 %v2876_v62  ;;  %v1477_v34 = vsub.f32 %v3036_v3, %v3719_v43 }
  0xd1   : > { %1356 = vmatpush.msrb.mxu2 %v3744_v7  ;;  %1401 = vmatpush.msrb.mxu3 %v2851_v44  ;;  %3745 = vst [vmem:[#allocation6_spill] sm:$0xff] %v3090_v8  ;;  %v628_v44 = vld [vmem:[%s3696_s1 + $0x88] sm:$0xff]  ;;  %v1090_v1 = vsub.f32 %v3055_v27, %v3090_v8  ;;  %v3131_v24 = vsub.f32 %v630_v26, %v3100_v53  ;;  %v3168_v26 = vand.u32 4294901760, %v622_v10 }
  0xd2   : > { %1084 = vmatmul.f32.vlgmr.msra.gmra.mxu2 %v3066_v22  ;;  %1197 = vmatmul.f32.gmra.mxu3 %v3043_v61  ;;  %v3125_v23 = vand.u32 4294901760, %v628_v44  ;;  %v1478_v29 = vand.u32 4294901760, %v1477_v34  ;;  %v620_v7 = vld [vmem:[%s3696_s1 + $0x48] sm:$0xff]  ;;  %v1501_v34 = vsub.f32 %v3115_v0, %v3711_v17 }
  0xd3   : > { %1233 = vmatpush.msrb.mxu0 %v2854_v6  ;;  %1289 = vmatpush.msrb.mxu1 %v2887_v37  ;;  %v626_v6 = vld [vmem:[%s3696_s1 + $0x78] sm:$0xff]  ;;  %v3151_v56 = vand.u32 4294901760, %v1090_v1  ;;  %v3708_v4 = vand.u32 4294901760, %v3131_v24  ;;  %v3196_v1 = vsub.f32 %v622_v10, %v3168_v26 }
  0xd4   : > { %1360 = vmatpush.msrb.mxu2 %v3746_v58  ;;  %1403 = vmatpush.msrb.mxu3 %v2864_v49  ;;  %v3714_v49 = vand.u32 4294901760, %v3093_v12  ;;  %v3140_v36 = vand.u32 4294901760, %v626_v6  ;;  %v3157_v15 = vsub.f32 %v628_v44, %v3125_v23 }
  0xd5   : > { %1236 = vmatpush.msrb.mxu0 %v2867_v55  ;;  %1291 = vmatpush.msrb.mxu1 %v2903_v18  ;;  %v624_v55 = vld [vmem:[%s3696_s1 + $0x68] sm:$0xff]  ;;  %3749 = vst [vmem:[#allocation7_spill] sm:$0xff] %v3151_v56  ;;  %v1507_v58 = vsub.f32 %v3131_v24, %v3708_v4 }
  0xd6   : > { %1364 = vmatpush.msrb.mxu2 %v3747_v14  ;;  %1405 = vmatpush.msrb.mxu3 %v2876_v62  ;;  %v1484_v62 = vand.u32 4294901760, %v1483_v31  ;;  %v3159_v45 = vand.u32 4294901760, %v624_v55  ;;  %v3166_v48 = vsub.f32 %v626_v6, %v3140_v36  ;;  %v3191_v31 = vand.u32 4294901760, %v620_v7 }
  0xd7   : > { %1473 = vmatpush.msra.mxu1 %v1472_v25  ;;  %1002 = vmatmul.f32.gmra.mxu0 %v2943_v30  ;;  %v618_v25 = vld [vmem:[%s3696_s1 + $0x38] sm:$0xff]  ;;  %v1502_v14 = vand.u32 4294901760, %v1501_v34  ;;  %v612_v34 = vld [vmem:[%s3696_s1 + $0x8] sm:$0xff] }
  0xd8   : > { %1239 = vmatpush.msrb.mxu0 %v2879_v9  ;;  %1295 = vmatmul.f32.vlgmr.msrb.gmra.mxu1 %v3013_v39  ;;  %v1495_v9 = vsub.f32 %v3093_v12, %v3714_v49  ;;  %v3181_v44 = vsub.f32 %v624_v55, %v3159_v45  ;;  %v3706_v6 = vand.u32 4294901760, %v3166_v48  ;;  %v3216_v10 = vsub.f32 %v620_v7, %v3191_v31 }
  0xd9   : > { %1368 = vmatpush.msrb.mxu2 %v3748_v50  ;;  %1407 = vmatpush.msrb.mxu3 %v2887_v37  ;;  %v1490_v37 = vand.u32 4294901760, %v1489_v28 }
  0xda   : > { %1479 = vmatpush.msra.mxu1 %v1478_v29  ;;  %1242 = vmatpush.msrb.mxu0 %v2890_v38  ;;  %v1496_v38 = vand.u32 4294901760, %v1495_v9  ;;  %v3203_v29 = vand.u32 4294901760, %v618_v25  ;;  %v3709_v28 = vand.u32 4294901760, %v3181_v44  ;;  %v1519_v9 = vsub.f32 %v3166_v48, %v3706_v6 }
  0xdb   : > { %1575 = vmatpush.msra.mxu2 %v3019_v2  ;;  %1409 = vmatpush.msrb.mxu3 %v2903_v18  ;;  %v3707_v18 = vand.u32 4294901760, %v3157_v15 }
  0xdc   : > { %1485 = vmatpush.msra.mxu1 %v1484_v62  ;;  %1092 = vmatmul.f32.gmra.mxu2 %v3151_v56  ;;  %v614_v62 = vld [vmem:[%s3696_s1 + $0x18] sm:$0xff]  ;;  %v3231_v7 = vsub.f32 %v618_v25, %v3203_v29  ;;  %v1525_v6 = vsub.f32 %v3181_v44, %v3709_v28  ;;  %v3245_v25 = vand.u32 4294901760, %v612_v34  ;;  %v1520_v4 = vand.u32 4294901760, %v1519_v9  ;;  %v656_v56 = vld [vmem:[%s3696_s1 + $0x168] sm:$0xff] }
  0xdd   : > { %1578 = vmatpush.msra.mxu2 %v3036_v3  ;;  %1633 = vmatpush.msra.mxu3 %v2992_v46  ;;  %v1513_v55 = vsub.f32 %v3157_v15, %v3707_v18  ;;  %v3712_v18 = vand.u32 4294901760, %v3216_v10 }
  0xde   : > { %1245 = vmatpush.msrb.mxu0 %v2906_v19  ;;  %1411 = vmatmul.f32.vlgmr.msrb.gmra.mxu3 %v2989_v59  ;;  %v616_v19 = vld [vmem:[%s3696_s1 + $0x28] sm:$0xff]  ;;  %v1526_v28 = vand.u32 4294901760, %v1525_v6  ;;  %v3266_v17 = vsub.f32 %v612_v34, %v3245_v25  ;;  %v674_v6 = vld [vmem:[%s3696_s1 + $0x1f8] sm:$0xff] }
  0xdf   : > { %1491 = vmatpush.msra.mxu1 %v1490_v37  ;;  %1581 = vmatpush.msra.mxu2 %v3052_v20  ;;  %v3218_v50 = vand.u32 4294901760, %v616_v19  ;;  %v3710_v37 = vand.u32 4294901760, %v3196_v1  ;;  %v1537_v9 = vsub.f32 %v3216_v10, %v3712_v18  ;;  %v3288_v49 = vand.u32 4294901760, %v674_v6 }
  0xe0   : > { %1635 = vmatpush.msra.mxu3 %v3010_v5  ;;  %1248 = vmatpush.msrb.mxu0 %v2914_v35  ;;  %v1508_v35 = vand.u32 4294901760, %v1507_v58  ;;  %v1514_v58 = vand.u32 4294901760, %v1513_v55  ;;  %3750 = vst [vmem:[#allocation8_spill] sm:$0xff] %v3266_v17 }
  0xe1   : > { %1497 = vmatpush.msra.mxu1 %v1496_v38  ;;  %1584 = vmatpush.msra.mxu2 %v3076_v57  ;;  %v3233_v38 = vand.u32 4294901760, %v614_v62  ;;  %v1531_v55 = vsub.f32 %v3196_v1, %v3710_v37  ;;  %v1538_v34 = vand.u32 4294901760, %v1537_v9 }
  0xe2   : > { %1420 = vmatpush.msra.mxu0 %v2992_v46  ;;  %1637 = vmatpush.msra.mxu3 %v3023_v32 }
  0xe3   : > { %1251 = vmatmul.f32.vlgmr.msrb.gmra.mxu0 %v3000_v21  ;;  %1301 = vmatmul.f32.gmra.mxu1 %v3090_v8  ;;  %v660_v21 = vld [vmem:[%s3696_s1 + $0x188] sm:$0xff] }
  0xe4   : > { %1422 = vmatpush.msra.mxu0 %v3010_v5  ;;  %1503 = vmatpush.msra.mxu1 %v1502_v14  ;;  %v3243_v14 = vsub.f32 %v616_v19, %v3218_v50  ;;  %v3256_v19 = vsub.f32 %v614_v62, %v3233_v38  ;;  %v1532_v62 = vand.u32 4294901760, %v1531_v55 }
  0xe5   : > { %1587 = vmatpush.msra.mxu2 %v3093_v12  ;;  %1639 = vmatpush.msra.mxu3 %v3046_v51 }
  0xe6   : > { %1424 = vmatpush.msra.mxu0 %v3023_v32  ;;  %1509 = vmatpush.msra.mxu1 %v1508_v35  ;;  %v3713_v35 = vand.u32 4294901760, %v3231_v7  ;;  %v3716_v37 = vand.u32 4294901760, %v3243_v14  ;;  %v3717_v18 = vand.u32 4294901760, %v3256_v19 }
  0xe7   : > { %1590 = vmatpush.msra.mxu2 %v3115_v0  ;;  %1641 = vmatpush.msra.mxu3 %v3059_v16 }
  0xe8   : > { %1370 = vmatmul.f32.vlgmr.msrb.gmra.mxu2 %v2989_v59  ;;  %1415 = vmatmul.f32.gmra.mxu3 %v3043_v61  ;;  %v1549_v55 = vsub.f32 %v3243_v14, %v3716_v37  ;;  %v1555_v9 = vsub.f32 %v3256_v19, %v3717_v18  ;;  %v670_v37 = vld [vmem:[%s3696_s1 + $0x1d8] sm:$0xff]  ;;  %v3308_v18 = vsub.f32 %v674_v6, %v3288_v49 }
  0xe9   : > { %1426 = vmatpush.msra.mxu0 %v3046_v51  ;;  %1515 = vmatpush.msra.mxu1 %v1514_v58  ;;  %v1543_v58 = vsub.f32 %v3231_v7, %v3713_v35  ;;  %v3720_v35 = vand.u32 4294901760, %v3266_v17  ;;  %v666_v6 = vld [vmem:[%s3696_s1 + $0x1b8] sm:$0xff] }
  0xea   : > { %1593 = vmatpush.msra.mxu2 %v3131_v24  ;;  %1643 = vmatpush.msra.mxu3 %v3084_v47 }
  0xeb   : > { %1428 = vmatpush.msra.mxu0 %v3059_v16  ;;  %1521 = vmatpush.msra.mxu1 %v1520_v4  ;;  %v672_v4 = vld [vmem:[%s3696_s1 + $0x1e8] sm:$0xff] }
  0xec   : > { %1596 = vmatpush.msra.mxu2 %v3157_v15  ;;  %1645 = vmatpush.msra.mxu3 %v3100_v53  ;;  %v3296_v54 = vand.u32 4294901760, %v672_v4 }
  0xed   : > { %1256 = vmatmul.f32.gmra.mxu0 %v3055_v27  ;;  %1527 = vmatpush.msra.mxu1 %v1526_v28  ;;  %v1544_v28 = vand.u32 4294901760, %v1543_v58  ;;  %v1561_v58 = vsub.f32 %v3266_v17, %v3720_v35 }
  0xee   : > { %1430 = vmatpush.msra.mxu0 %v3084_v47  ;;  %1599 = vmatpush.msra.mxu2 %v3166_v48  ;;  %v3319_v43 = vsub.f32 %v672_v4, %v3296_v54  ;;  %v664_v4 = vld [vmem:[%s3696_s1 + $0x1a8] sm:$0xff] }
  0xef   : > { %1647 = vmatpush.msra.mxu3 %v3125_v23  ;;  %1533 = vmatpush.msra.mxu1 %v1532_v62  ;;  %v1550_v62 = vand.u32 4294901760, %v1549_v55  ;;  %v3316_v55 = vand.u32 4294901760, %v670_v37  ;;  %v1562_v35 = vand.u32 4294901760, %v1561_v58  ;;  %v3340_v58 = vand.u32 4294901760, %v666_v6 }
  0xf0   : > { %1432 = vmatpush.msra.mxu0 %v3100_v53  ;;  %1602 = vmatpush.msra.mxu2 %v3181_v44  ;;  %v3351_v33 = vand.u32 4294901760, %v664_v4 }
  0xf1   : > { %1649 = vmatpush.msra.mxu3 %v3140_v36  ;;  %1374 = vmatmul.f32.gmra.mxu2 %v3043_v61  ;;  %v3365_v8 = vsub.f32 %v666_v6, %v3340_v58  ;;  %v658_v61 = vld [vmem:[%s3696_s1 + $0x178] sm:$0xff] }
  0xf2   : > { %1434 = vmatpush.msra.mxu0 %v3125_v23  ;;  %1539 = vmatpush.msra.mxu1 %v1538_v34  ;;  %v1556_v34 = vand.u32 4294901760, %v1555_v9  ;;  %v3328_v9 = vand.u32 4294901760, %v668_v63  ;;  %v3378_v6 = vsub.f32 %v664_v4, %v3351_v33 }
  0xf3   : > { %1605 = vmatpush.msra.mxu2 %v3196_v1  ;;  %1651 = vmatpush.msra.mxu3 %v3159_v45  ;;  %3754 = vst [vmem:[#allocation11_spill] sm:$0xff] %v3365_v8 }
  0xf4   : > { %1436 = vmatpush.msra.mxu0 %v3140_v36  ;;  %1545 = vmatpush.msra.mxu1 %v1544_v28  ;;  %v3723_v28 = vand.u32 4294901760, %v3308_v18 }
  0xf5   : > { %1608 = vmatpush.msra.mxu2 %v3216_v10  ;;  %1653 = vmatpush.msra.mxu3 %v3168_v26 }
  0xf6   : > { %1438 = vmatpush.msra.mxu0 %v3159_v45  ;;  %1551 = vmatpush.msra.mxu1 %v1550_v62  ;;  %v3338_v62 = vsub.f32 %v670_v37, %v3316_v55  ;;  %v1843_v27 = vsub.f32 %v3308_v18, %v3723_v28  ;;  %v662_v37 = vld [vmem:[%s3696_s1 + $0x198] sm:$0xff] }
  0xf7   : > { %1611 = vmatpush.msra.mxu2 %v3231_v7  ;;  %1655 = vmatpush.msra.mxu3 %v3191_v31  ;;  %v3372_v39 = vand.u32 4294901760, %v662_v37 }
  0xf8   : > { %1440 = vmatpush.msra.mxu0 %v3168_v26  ;;  %1557 = vmatpush.msra.mxu1 %v1556_v34  ;;  %3751 = vst [vmem:[#allocation9_spill] sm:$0xff] %v3338_v62  ;;  %v3349_v34 = vsub.f32 %v668_v63, %v3328_v9 }
  0xf9   : > { %1614 = vmatpush.msra.mxu2 %v3243_v14  ;;  %1657 = vmatpush.msra.mxu3 %v3203_v29 }
  0xfa   : > { %1442 = vmatpush.msra.mxu0 %v3191_v31  ;;  %1563 = vmatpush.msra.mxu1 %v1562_v35  ;;  %3752 = vst [vmem:[#allocation10_spill] sm:$0xff] %v3349_v34  ;;  %v3753_v35 = vand.u32 4294901760, %v3319_v43 }
  0xfb   : > { %1617 = vmatpush.msra.mxu2 %v3256_v19  ;;  %1659 = vmatpush.msra.mxu3 %v3218_v50 }
  0xfc   : > { %1565 = vmatmul.f32.vlgmr.msra.gmra.mxu1 %v2923_v41  ;;  %1444 = vmatpush.msra.mxu0 %v3203_v29  ;;  %v1849_v28 = vsub.f32 %v3319_v43, %v3753_v35  ;;  %v1844_v35 = vand.u32 4294901760, %v1843_v27  ;;  %v3755_v27 = vand.u32 4294901760, %v3338_v62 }
  0xfd   : > { %1751 = vmatpush.msrb.mxu1 %v2992_v46  ;;  %1620 = vmatpush.msra.mxu2 %v3266_v17  ;;  %v3385_v46 = vand.u32 4294901760, %v660_v21  ;;  %v3401_v17 = vand.u32 4294901760, %v658_v61 }
  0xfe   : > { %1661 = vmatpush.msra.mxu3 %v3233_v38  ;;  %1623 = vmatmul.f32.vlgmr.msra.gmra.mxu2 %v2926_v40  ;;  %v1850_v40 = vand.u32 4294901760, %v1849_v28  ;;  %v1855_v4 = vsub.f32 %v3338_v62, %v3755_v27  ;;  %v3756_v28 = vand.u32 4294901760, %v3349_v34 }
  0xff   : > { %1753 = vmatpush.msrb.mxu1 %v3010_v5  ;;  %1792 = vmatpush.msrb.mxu2 %v3288_v49  ;;  %v3399_v5 = vsub.f32 %v662_v37, %v3372_v39  ;;  %v3416_v37 = vand.u32 4294901760, %v656_v56 }
 0x100   : > { %1446 = vmatpush.msra.mxu0 %v3218_v50  ;;  %1663 = vmatpush.msra.mxu3 %v3245_v25  ;;  %v1861_v27 = vsub.f32 %v3349_v34, %v3756_v28  ;;  %v3757_v28 = vand.u32 4294901760, %v3365_v8  ;;  %v652_v34 = vld [vmem:[%s3696_s1 + $0x148] sm:$0xff] }
 0x101   : > { %1667 = vmatmul.f32.vlgmr.msra.gmra.mxu3 %v2932_v60  ;;  %1755 = vmatpush.msrb.mxu1 %v3023_v32  ;;  %v654_v60 = vld [vmem:[%s3696_s1 + $0x158] sm:$0xff]  ;;  %v3414_v32 = vsub.f32 %v660_v21, %v3385_v46  ;;  %v3759_v21 = vand.u32 4294901760, %v3019_v2  ;;  %v3760_v2 = vand.u32 4294901760, %v3036_v3  ;;  %v3762_v3 = vand.u32 4294901760, %v3052_v20 }
 0x102   : > { %1794 = vmatpush.msrb.mxu2 %v3296_v54  ;;  %1845 = vmatpush.msrb.mxu3 %v1844_v35  ;;  %v1856_v35 = vand.u32 4294901760, %v1855_v4  ;;  %v1867_v63 = vsub.f32 %v3365_v8, %v3757_v28  ;;  %v3431_v62 = vand.u32 4294901760, %v654_v60  ;;  %v3758_v4 = vand.u32 4294901760, %v3378_v6  ;;  %v650_v8 = vld [vmem:[%s3696_s1 + $0x138] sm:$0xff] }
 0x103   : > { %1448 = vmatpush.msra.mxu0 %v3233_v38  ;;  %1757 = vmatpush.msrb.mxu1 %v3046_v51  ;;  %v3429_v51 = vsub.f32 %v658_v61, %v3401_v17 }
 0x104   : > { %1796 = vmatpush.msrb.mxu2 %v3316_v55  ;;  %1851 = vmatpush.msrb.mxu3 %v1850_v40  ;;  %v1862_v40 = vand.u32 4294901760, %v1861_v27  ;;  %v1873_v28 = vsub.f32 %v3378_v6, %v3758_v4  ;;  %v1868_v27 = vand.u32 4294901760, %v1867_v63  ;;  %v648_v4 = vld [vmem:[%s3696_s1 + $0x128] sm:$0xff] }
 0x105   : > { %1450 = vmatpush.msra.mxu0 %v3245_v25  ;;  %1569 = vmatmul.f32.gmra.mxu1 %v2943_v30  ;;  %v3477_v61 = vand.u32 4294901760, %v648_v4 }
 0x106   : > { %1456 = vmatmul.f32.vlgmr.msra.gmra.mxu0 %v2946_v52  ;;  %1759 = vmatpush.msrb.mxu1 %v3059_v16  ;;  %v3446_v52 = vsub.f32 %v656_v56, %v3416_v37  ;;  %v3448_v16 = vand.u32 4294901760, %v652_v34  ;;  %v1874_v63 = vand.u32 4294901760, %v1873_v28  ;;  %v3765_v28 = vand.u32 4294901760, %v3429_v51 }
 0x107   : > { %1680 = vmatpush.msrb.mxu0 %v3759_v21  ;;  %1798 = vmatpush.msrb.mxu2 %v3328_v9  ;;  %v3761_v21 = vand.u32 4294901760, %v3399_v5 }
 0x108   : > { %1857 = vmatpush.msrb.mxu3 %v1856_v35  ;;  %1628 = vmatmul.f32.gmra.mxu2 %v2952_v11  ;;  %v3462_v35 = vsub.f32 %v654_v60, %v3431_v62  ;;  %v3464_v11 = vand.u32 4294901760, %v650_v8  ;;  %v3475_v60 = vsub.f32 %v652_v34, %v3448_v16  ;;  %v1891_v34 = vsub.f32 %v3429_v51, %v3765_v28 }
 0x109   : > { %1684 = vmatpush.msrb.mxu0 %v3760_v2  ;;  %1761 = vmatpush.msrb.mxu1 %v3084_v47  ;;  %v1879_v56 = vsub.f32 %v3399_v5, %v3761_v21  ;;  %v3763_v47 = vand.u32 4294901760, %v3414_v32  ;;  %v1896_v21 = vand.u32 4294901760, %v3446_v52  ;;  %v3766_v28 = vand.u32 4294901760, %v3093_v12 }
 0x10a   : > { %1800 = vmatpush.msrb.mxu2 %v3340_v58  ;;  %1863 = vmatpush.msrb.mxu3 %v1862_v40  ;;  %v646_v40 = vld [vmem:[%s3696_s1 + $0x118] sm:$0xff] }
 0x10b   : > { %1673 = vmatmul.f32.gmra.mxu3 %v2962_v42  ;;  %1688 = vmatpush.msrb.mxu0 %v3762_v3  ;;  %v1885_v2 = vsub.f32 %v3414_v32, %v3763_v47  ;;  %v3764_v42 = vand.u32 4294901760, %v3076_v57  ;;  %v1880_v20 = vand.u32 4294901760, %v1879_v56  ;;  %v1902_v3 = vand.u32 4294901760, %v3462_v35 }
 0x10c   : > { %1763 = vmatpush.msrb.mxu1 %v3100_v53  ;;  %1802 = vmatpush.msrb.mxu2 %v3351_v33  ;;  %v3491_v47 = vsub.f32 %v650_v8, %v3464_v11  ;;  %v644_v53 = vld [vmem:[%s3696_s1 + $0x108] sm:$0xff]  ;;  %v3498_v57 = vand.u32 4294901760, %v646_v40  ;;  %v1897_v56 = vsub.f32 %v3446_v52, %v1896_v21  ;;  %v1908_v8 = vand.u32 4294901760, %v3475_v60 }
 0x10d   : > { %1869 = vmatpush.msrb.mxu3 %v1868_v27  ;;  %1692 = vmatpush.msrb.mxu0 %v3764_v42  ;;  %v1886_v27 = vand.u32 4294901760, %v1885_v2  ;;  %v3506_v42 = vsub.f32 %v648_v4, %v3477_v61  ;;  %v3767_v4 = vand.u32 4294901760, %v3115_v0 }
 0x10e   : > { %1765 = vmatpush.msrb.mxu1 %v3125_v23  ;;  %1804 = vmatpush.msrb.mxu2 %v3372_v39  ;;  %v3511_v23 = vand.u32 4294901760, %v644_v53  ;;  %v1914_v2 = vand.u32 4294901760, %v3491_v47  ;;  %v3522_v12 = vsub.f32 %v646_v40, %v3498_v57 }
 0x10f   : > { %1875 = vmatpush.msrb.mxu3 %v1874_v63  ;;  %1464 = vmatmul.f32.gmra.mxu0 %v2975_v13  ;;  %v1892_v13 = vand.u32 4294901760, %v1891_v34  ;;  %v1903_v63 = vsub.f32 %v3462_v35, %v1902_v3  ;;  %v1920_v34 = vand.u32 4294901760, %v3506_v42 }
 0x110   : > { %1696 = vmatpush.msrb.mxu0 %v3766_v28  ;;  %1767 = vmatpush.msrb.mxu1 %v3140_v36  ;;  %v1898_v36 = vand.u32 4294901760, %v1897_v56  ;;  %v3768_v28 = vand.u32 4294901760, %v3131_v24  ;;  %v3533_v0 = vsub.f32 %v644_v53, %v3511_v23  ;;  %v1915_v40 = vsub.f32 %v3491_v47, %v1914_v2 }
 0x111   : > { %1806 = vmatpush.msrb.mxu2 %v3385_v46  ;;  %1881 = vmatpush.msrb.mxu3 %v1880_v20  ;;  %v1909_v20 = vsub.f32 %v3475_v60, %v1908_v8  ;;  %v1926_v24 = vand.u32 4294901760, %v3522_v12  ;;  %v1921_v53 = vsub.f32 %v3506_v42, %v1920_v34  ;;  %v3770_v56 = vand.u32 4294901760, %v3166_v48 }
 0x112   : > { %1700 = vmatpush.msrb.mxu0 %v3767_v4  ;;  %1769 = vmatpush.msrb.mxu1 %v3159_v45  ;;  %v1904_v45 = vand.u32 4294901760, %v1903_v63 }
 0x113   : > { %1808 = vmatpush.msrb.mxu2 %v3401_v17  ;;  %1887 = vmatpush.msrb.mxu3 %v1886_v27  ;;  %v3769_v27 = vand.u32 4294901760, %v3157_v15  ;;  %v1932_v15 = vand.u32 4294901760, %v3533_v0  ;;  %v1927_v63 = vsub.f32 %v3522_v12, %v1926_v24  ;;  %v1922_v48 = vand.u32 4294901760, %v1921_v53 }
 0x114   : > { %1704 = vmatpush.msrb.mxu0 %v3768_v28  ;;  %1771 = vmatpush.msrb.mxu1 %v3168_v26  ;;  %v1910_v26 = vand.u32 4294901760, %v1909_v20 }
 0x115   : > { %1810 = vmatpush.msrb.mxu2 %v3416_v37  ;;  %1893 = vmatpush.msrb.mxu3 %v1892_v13  ;;  %v3771_v13 = vand.u32 4294901760, %v3181_v44  ;;  %v1933_v44 = vsub.f32 %v3533_v0, %v1932_v15  ;;  %v1928_v4 = vand.u32 4294901760, %v1927_v63 }
 0x116   : > { %1708 = vmatpush.msrb.mxu0 %v3769_v27  ;;  %1773 = vmatpush.msrb.mxu1 %v3191_v31  ;;  %v1916_v31 = vand.u32 4294901760, %v1915_v40 }
 0x117   : > { %1812 = vmatpush.msrb.mxu2 %v3431_v62  ;;  %1899 = vmatpush.msrb.mxu3 %v1898_v36  ;;  %v3779_v36 = vld [vmem:[#allocation9_spill] sm:$0xff] }
 0x118   : > { %1712 = vmatpush.msrb.mxu0 %v3770_v56  ;;  %1775 = vmatpush.msrb.mxu1 %v3203_v29  ;;  %v3772_v29 = vand.u32 4294901760, %v3196_v1  ;;  %v3774_v1 = vand.u32 4294901760, %v3231_v7  ;;  %v3777_v7 = vand.u32 4294901760, %v3319_v43  ;;  %v3780_v20 = vand.u32 4294901760, %v3779_v36 }
 0x119   : > { %1814 = vmatpush.msrb.mxu2 %v3448_v16  ;;  %1905 = vmatpush.msrb.mxu3 %v1904_v45  ;;  %v3785_v45 = vld [vmem:[#allocation7_spill] sm:$0xff] }
 0x11a   : > { %1716 = vmatpush.msrb.mxu0 %v3771_v13  ;;  %1777 = vmatpush.msrb.mxu1 %v3218_v50  ;;  %v3773_v50 = vand.u32 4294901760, %v3216_v10  ;;  %v3775_v10 = vand.u32 4294901760, %v3308_v18 }
 0x11b   : > { %1816 = vmatpush.msrb.mxu2 %v3464_v11  ;;  %1911 = vmatpush.msrb.mxu3 %v1910_v26 }
 0x11c   : > { %1720 = vmatpush.msrb.mxu0 %v3772_v29  ;;  %1779 = vmatpush.msrb.mxu1 %v3233_v38  ;;  %v1934_v38 = vand.u32 4294901760, %v1933_v44 }
 0x11d   : > { %1818 = vmatpush.msrb.mxu2 %v3477_v61  ;;  %1917 = vmatpush.msrb.mxu3 %v1916_v31 }
 0x11e   : > { %1724 = vmatpush.msrb.mxu0 %v3773_v50  ;;  %1781 = vmatpush.msrb.mxu1 %v3245_v25  ;;  %v3776_v25 = vand.u32 4294901760, %v3243_v14  ;;  %v3781_v14 = vld [vmem:[#allocation8_spill] sm:$0xff] }
 0x11f   : > { %1820 = vmatpush.msrb.mxu2 %v3498_v57  ;;  %1923 = vmatpush.msrb.mxu3 %v1922_v48  ;;  %v3782_v28 = vand.u32 4294901760, %v3781_v14 }
 0x120   : > { %1783 = vmatmul.f32.vlgmr.msrb.gmra.mxu1 %v2923_v41  ;;  %1728 = vmatpush.msrb.mxu0 %v3774_v1 }
 0x121   : > { %2005 = vmatpush.msra.mxu1 %v3288_v49  ;;  %1822 = vmatpush.msrb.mxu2 %v3511_v23 }
 0x122   : > { %1929 = vmatpush.msrb.mxu3 %v1928_v4  ;;  %1828 = vmatmul.f32.vlgmr.msrb.gmra.mxu2 %v3066_v22  ;;  %v3778_v22 = vand.u32 4294901760, %v3256_v19 }
 0x123   : > { %2007 = vmatpush.msra.mxu1 %v3296_v54  ;;  %2052 = vmatpush.msra.mxu2 %v3775_v10 }
 0x124   : > { %1732 = vmatpush.msrb.mxu0 %v3776_v25  ;;  %1935 = vmatpush.msrb.mxu3 %v1934_v38 }
 0x125   : > { %1937 = vmatmul.f32.vlgmr.msrb.gmra.mxu3 %v2989_v59  ;;  %2009 = vmatpush.msra.mxu1 %v3316_v55 }
 0x126   : > { %2056 = vmatpush.msra.mxu2 %v3777_v7  ;;  %2123 = vmatpush.msra.mxu3 %v3288_v49  ;;  %v3783_v49 = vld [vmem:[#allocation10_spill] sm:$0xff] }
 0x127   : > { %1736 = vmatpush.msrb.mxu0 %v3778_v22  ;;  %2011 = vmatpush.msra.mxu1 %v3328_v9  ;;  %v3784_v19 = vand.u32 4294901760, %v3783_v49 }
 0x128   : > { %2060 = vmatpush.msra.mxu2 %v3780_v20  ;;  %2125 = vmatpush.msra.mxu3 %v3296_v54  ;;  %v3786_v54 = vld [vmem:[#allocation11_spill] sm:$0xff] }
 0x129   : > { %1740 = vmatpush.msrb.mxu0 %v3782_v28  ;;  %1787 = vmatmul.f32.gmra.mxu1 %v2943_v30  ;;  %v3787_v40 = vand.u32 4294901760, %v3786_v54 }
 0x12a   : > { %1742 = vmatmul.f32.vlgmr.msrb.gmra.mxu0 %v2923_v41  ;;  %2013 = vmatpush.msra.mxu1 %v3340_v58  ;;  %v3788_v41 = vld [vmem:[#allocation4_spill] sm:$0xff] }
 0x12b   : > { %1947 = vmatpush.msra.mxu0 %v3308_v18  ;;  %2064 = vmatpush.msra.mxu2 %v3784_v19  ;;  %v3789_v18 = vand.u32 4294901760, %v3378_v6 }
 0x12c   : > { %2127 = vmatpush.msra.mxu3 %v3316_v55  ;;  %1836 = vmatmul.f32.gmra.mxu2 %v3785_v45  ;;  %v3791_v55 = vand.u32 4294901760, %v3414_v32 }
 0x12d   : > { %1950 = vmatpush.msra.mxu0 %v3319_v43  ;;  %2015 = vmatpush.msra.mxu1 %v3351_v33  ;;  %v3790_v43 = vand.u32 4294901760, %v3399_v5 }
 0x12e   : > { %2068 = vmatpush.msra.mxu2 %v3787_v40  ;;  %2129 = vmatpush.msra.mxu3 %v3328_v9  ;;  %v3792_v9 = vand.u32 4294901760, %v3429_v51 }
 0x12f   : > { %1941 = vmatmul.f32.gmra.mxu3 %v3788_v41  ;;  %1953 = vmatpush.msra.mxu0 %v3779_v36 }
 0x130   : > { %2017 = vmatpush.msra.mxu1 %v3372_v39  ;;  %2072 = vmatpush.msra.mxu2 %v3789_v18 }
 0x131   : > { %2131 = vmatpush.msra.mxu3 %v3340_v58  ;;  %1956 = vmatpush.msra.mxu0 %v3783_v49 }
 0x132   : > { %2019 = vmatpush.msra.mxu1 %v3385_v46  ;;  %2076 = vmatpush.msra.mxu2 %v3790_v43 }
 0x133   : > { %2133 = vmatpush.msra.mxu3 %v3351_v33  ;;  %1746 = vmatmul.f32.gmra.mxu0 %v2943_v30  ;;  %v3793_v33 = vld [vmem:[#allocation3_spill] sm:$0xff] }
 0x134   : > { %1959 = vmatpush.msra.mxu0 %v3786_v54  ;;  %2021 = vmatpush.msra.mxu1 %v3401_v17 }
 0x135   : > { %2080 = vmatpush.msra.mxu2 %v3791_v55  ;;  %2135 = vmatpush.msra.mxu3 %v3372_v39  ;;  %v822_v39 = vpop.f32.mrf.mxu1 }
 0x136   : > { %1962 = vmatpush.msra.mxu0 %v3378_v6  ;;  %2023 = vmatpush.msra.mxu1 %v3416_v37  ;;  %v713_v30 = vpop.f32.mrf.mxu0  ;;  %v880_v58 = vpop.f32.mrf.mxu2 }
 0x137   : > { %2084 = vmatpush.msra.mxu2 %v3792_v9  ;;  %2137 = vmatpush.msra.mxu3 %v3385_v46  ;;  %v3794_v46 = vld [vmem:[#allocation2_spill] sm:$0xff] }
 0x138   : > { %1965 = vmatpush.msra.mxu0 %v3399_v5  ;;  %2025 = vmatpush.msra.mxu1 %v3431_v62  ;;  %v3795_v5 = vld [vmem:[#allocation6_spill] sm:$0xff] }
 0x139   : > { %2088 = vmatpush.msra.mxu2 %v1896_v21  ;;  %2139 = vmatpush.msra.mxu3 %v3401_v17  ;;  %v924_v17 = vpop.f32.mrf.mxu3 }
 0x13a   : > { %1968 = vmatpush.msra.mxu0 %v3414_v32  ;;  %2027 = vmatpush.msra.mxu1 %v3448_v16 }
 0x13b   : > { %2092 = vmatpush.msra.mxu2 %v1902_v3  ;;  %2141 = vmatpush.msra.mxu3 %v3416_v37 }
 0x13c   : > { %1971 = vmatpush.msra.mxu0 %v3429_v51  ;;  %2029 = vmatpush.msra.mxu1 %v3464_v11 }
 0x13d   : > { %2096 = vmatpush.msra.mxu2 %v1908_v8  ;;  %2143 = vmatpush.msra.mxu3 %v3431_v62  ;;  %v826_v6 = vpop.f32.mrf.mxu1 }
 0x13e   : > { %1974 = vmatpush.msra.mxu0 %v3446_v52  ;;  %2031 = vmatpush.msra.mxu1 %v3477_v61  ;;  %v3796_v52 = vld [vmem:[#allocation5_spill] sm:$0xff] }
 0x13f   : > { %2100 = vmatpush.msra.mxu2 %v1914_v2  ;;  %2145 = vmatpush.msra.mxu3 %v3448_v16  ;;  %v885_v51 = vpop.f32.mrf.mxu2 }
 0x140   : > { %1977 = vmatpush.msra.mxu0 %v3462_v35  ;;  %2033 = vmatpush.msra.mxu1 %v3498_v57  ;;  %v721_v62 = vpop.f32.mrf.mxu0 }
 0x141   : > { %2104 = vmatpush.msra.mxu2 %v1920_v34  ;;  %2147 = vmatpush.msra.mxu3 %v3464_v11  ;;  %v827_v3 = vadd.f32 %v826_v6, %v721_v62 }
 0x142   : > { %1980 = vmatpush.msra.mxu0 %v3475_v60  ;;  %2035 = vmatpush.msra.mxu1 %v3511_v23  ;;  %v930_v32 = vpop.f32.mrf.mxu3 }
 0x143   : > { %2108 = vmatpush.msra.mxu2 %v1926_v24  ;;  %2149 = vmatpush.msra.mxu3 %v3477_v61  ;;  %v823_v61 = vadd.f32 %v822_v39, %v713_v30 }
 0x144   : > { %2039 = vmatmul.f32.vlgmr.msra.gmra.mxu1 %v3793_v33  ;;  %1983 = vmatpush.msra.mxu0 %v3491_v47 }
 0x145   : > { %2112 = vmatpush.msra.mxu2 %v1932_v15  ;;  %2151 = vmatpush.msra.mxu3 %v3498_v57  ;;  %v1040_v16 = vpop.f32.mrf.mxu1  ;;  %v886_v57 = vadd.f32 %v885_v51, %v827_v3 }
 0x146   : > { %2114 = vmatmul.f32.vlgmr.msra.gmra.mxu2 %v2989_v59  ;;  %1986 = vmatpush.msra.mxu0 %v3506_v42 }
 0x147   : > { %2153 = vmatpush.msra.mxu3 %v3511_v23  ;;  %v931_v2 = vadd.f32 %v930_v32, %v886_v57 }
 0x148   : > { %2155 = vmatmul.f32.vlgmr.msra.gmra.mxu3 %v2989_v59  ;;  %1989 = vmatpush.msra.mxu0 %v3522_v12  ;;  %v881_v59 = vadd.f32 %v880_v58, %v823_v61 }
 0x14a   : > { %1992 = vmatpush.msra.mxu0 %v3533_v0  ;;  %v999_v37 = vpop.f32.mrf.mxu0  ;;  %v925_v11 = vadd.f32 %v924_v17, %v881_v59 }
 0x14b   : > { %1995 = vmatmul.f32.vlgmr.msra.gmra.mxu0 %v3794_v46 }
 0x14c   : > { %2045 = vmatmul.f32.gmra.mxu1 %v3795_v5  ;;  %v1194_v21 = vpop.f32.mrf.mxu3  ;;  %v1000_v47 = vadd.f32 %v999_v37, %v925_v11 }
 0x14d   : > { %v1044_v8 = vpop.f32.mrf.mxu1 }
 0x14e   : > { %2118 = vmatmul.f32.gmra.mxu2 %v3788_v41  ;;  %v1041_v42 = vadd.f32 %v1040_v16, %v1000_v47 }
 0x150   : > { %2159 = vmatmul.f32.gmra.mxu3 %v3788_v41 }
 0x153   : > { %2000 = vmatmul.f32.gmra.mxu0 %v3796_v52 }
 0x154   : > { %v1003_v60 = vpop.f32.mrf.mxu0 }
 0x155   : > { %v1085_v35 = vpop.f32.mrf.mxu2  ;;  %v1198_v34 = vpop.f32.mrf.mxu3  ;;  %v1004_v27 = vadd.f32 %v1003_v60, %v931_v2 }
 0x156   : > { %v1086_v23 = vadd.f32 %v1085_v35, %v1041_v42  ;;  %v1296_v56 = vpop.f32.mrf.mxu1 }
 0x157   : > { %v1045_v53 = vadd.f32 %v1044_v8, %v1004_v27 }
 0x158   : > { %v1195_v24 = vadd.f32 %v1194_v21, %v1086_v23 }
 0x15f   : > { %v1093_v12 = vpop.f32.mrf.mxu2 }
 0x160   : > { %v1252_v0 = vpop.f32.mrf.mxu0  ;;  %v1094_v15 = vadd.f32 %v1093_v12, %v1045_v53  ;;  %v1302_v1 = vpop.f32.mrf.mxu1 }
 0x161   : > { %v1253_v26 = vadd.f32 %v1252_v0, %v1195_v24  ;;  %v1412_v63 = vpop.f32.mrf.mxu3 }
 0x162   : > { %v1199_v44 = vadd.f32 %v1198_v34, %v1094_v15 }
 0x163   : > { %v1297_v31 = vadd.f32 %v1296_v56, %v1253_v26 }
 0x16a   : > { %v1257_v48 = vpop.f32.mrf.mxu0 }
 0x16b   : > { %v1371_v13 = vpop.f32.mrf.mxu2  ;;  %v1258_v4 = vadd.f32 %v1257_v48, %v1199_v44  ;;  %v1416_v7 = vpop.f32.mrf.mxu3 }
 0x16c   : > { %v1372_v29 = vadd.f32 %v1371_v13, %v1297_v31 }
 0x16d   : > { %v1303_v38 = vadd.f32 %v1302_v1, %v1258_v4 }
 0x16e   : > { %v1413_v50 = vadd.f32 %v1412_v63, %v1372_v29 }
 0x170   : > { %2163 = vst [vmem:[%s3680_s22] sm:$0xff] %v1413_v50 }
 0x174   : > { %v1375_v10 = vpop.f32.mrf.mxu2 }
 0x175   : > { %v1376_v25 = vadd.f32 %v1375_v10, %v1303_v38 }
 0x177   : > { %v1417_v22 = vadd.f32 %v1416_v7, %v1376_v25 }
 0x179   : > { %2165 = vst [vmem:[%s3680_s22 + $0x10] sm:$0xff] %v1417_v22  ;;  %v1566_v36 = vpop.f32.mrf.mxu1 }
 0x181   : > { %v1624_v14 = vpop.f32.mrf.mxu2 }
 0x182   : > { %v1570_v49 = vpop.f32.mrf.mxu1 }
 0x183   : > { %v1457_v20 = vpop.f32.mrf.mxu0 }
 0x184   : > { %v1668_v28 = vpop.f32.mrf.mxu3  ;;  %v1567_v54 = vadd.f32 %v1566_v36, %v1457_v20 }
 0x186   : > { %v1625_v41 = vadd.f32 %v1624_v14, %v1567_v54 }
 0x188   : > { %v1669_v9 = vadd.f32 %v1668_v28, %v1625_v41 }
 0x18b   : > { %v1629_v45 = vpop.f32.mrf.mxu2 }
 0x18c   : > { %v1465_v19 = vpop.f32.mrf.mxu0 }
 0x18d   : > { %v1571_v30 = vadd.f32 %v1570_v49, %v1465_v19 }
 0x18e   : > { %v1674_v40 = vpop.f32.mrf.mxu3 }
 0x18f   : > { %v1630_v17 = vadd.f32 %v1629_v45, %v1571_v30 }
 0x191   : > { %v1675_v46 = vadd.f32 %v1674_v40, %v1630_v17 }
 0x19d   : > { %v1784_v18 = vpop.f32.mrf.mxu1 }
 0x1a5   : > { %v1829_v55 = vpop.f32.mrf.mxu2 }
 0x1a6   : > { %v1788_v58 = vpop.f32.mrf.mxu1 }
 0x1a7   : > { %v1743_v43 = vpop.f32.mrf.mxu0 }
 0x1a8   : > { %v1938_v39 = vpop.f32.mrf.mxu3  ;;  %v1744_v33 = vadd.f32 %v1743_v43, %v1669_v9 }
 0x1aa   : > { %v1785_v62 = vadd.f32 %v1784_v18, %v1744_v33 }
 0x1ac   : > { %v1830_v32 = vadd.f32 %v1829_v55, %v1785_v62 }
 0x1ae   : > { %v1939_v61 = vadd.f32 %v1938_v39, %v1830_v32 }
 0x1af   : > { %v1837_v5 = vpop.f32.mrf.mxu2 }
 0x1b0   : > { %v1747_v6 = vpop.f32.mrf.mxu0 }
 0x1b1   : > { %v1748_v37 = vadd.f32 %v1747_v6, %v1675_v46 }
 0x1b2   : > { %v1942_v51 = vpop.f32.mrf.mxu3 }
 0x1b3   : > { %v1789_v52 = vadd.f32 %v1788_v58, %v1748_v37 }
 0x1b5   : > { %v1838_v21 = vadd.f32 %v1837_v5, %v1789_v52 }
 0x1b7   : > { %v1943_v57 = vadd.f32 %v1942_v51, %v1838_v21 }
 0x1c1   : > { %v2040_v59 = vpop.f32.mrf.mxu1 }
 0x1c8   : > { %v1996_v16 = vpop.f32.mrf.mxu0 }
 0x1c9   : > { %v1997_v35 = vadd.f32 %v1996_v16, %v1939_v61  ;;  %v2115_v11 = vpop.f32.mrf.mxu2  ;;  %v2046_v2 = vpop.f32.mrf.mxu1 }
 0x1cb   : > { %v2041_v60 = vadd.f32 %v2040_v59, %v1997_v35  ;;  %v2156_v3 = vpop.f32.mrf.mxu3 }
 0x1cd   : > { %v2116_v47 = vadd.f32 %v2115_v11, %v2041_v60 }
 0x1cf   : > { %v2157_v8 = vadd.f32 %v2156_v3, %v2116_v47 }
 0x1d0   : > { %v2001_v42 = vpop.f32.mrf.mxu0 }
 0x1d1   : > { %2164 = vst [vmem:[%s3680_s22 + $0x8] sm:$0xff] %v2157_v8  ;;  %v2002_v23 = vadd.f32 %v2001_v42, %v1943_v57  ;;  %v2119_v34 = vpop.f32.mrf.mxu2 }
 0x1d3   : > { %v2047_v12 = vadd.f32 %v2046_v2, %v2002_v23  ;;  %v2160_v27 = vpop.f32.mrf.mxu3 }
 0x1d5   : > { %v2120_v0 = vadd.f32 %v2119_v34, %v2047_v12 }
 0x1d7   : > { %v2161_v24 = vadd.f32 %v2160_v27, %v2120_v0 }
 0x1d9   : > { %2166 = vst [vmem:[%s3680_s22 + $0x18] sm:$0xff] %v2161_v24 }
 0x1da PF: > { %s13_s14 = sadd.s32 1, %s2329_s14   ;;  %s3797_s12 = smov %s2325_s13 }
 0x1db   : > { %p10_p5 = scmp.ge.s32.totalorder %s13_s14, 4   ;;  %s3798_s13 = smov %s3800_s15 }
 0x1dd   :  { %12 = sbr.rel (!%p10_p5) target bundleno = 2 (0x2), region = 65 }

</bundles_post_ra>
